<compile_context>
chip_gen: v5e
topology: v5e:2x2
jax: 0.10.0
libtpu: 0.0.40
codegen_flags: <defaults>
</compile_context>

<pallas_src>
import functools

import jax
import jax.numpy as jnp
import numpy as np
from jax.experimental import pallas as pl
from jax.experimental.pallas import tpu as pltpu


# -----------------------------------------------------------------------------
# Host-side parameter packing: one flat (rows, 32) f32 blob, 8-row aligned sections.
# -----------------------------------------------------------------------------
def pack_params(params, *, n_nodes, hidden, out_ch, kt, k_cheb, n_target):
    H, C, Kt, K, N = hidden, out_ch, kt, k_cheb, n_nodes
    width = max(H, 3 * C, n_target, 8)

    def pad8(n):
        return ((n + 7) // 8) * 8

    offs, rows = {}, 0

    def alloc(name, nrows):
        nonlocal rows
        offs[name] = rows
        rows += pad8(nrows)

    alloc("tc1_w", 3 * Kt)   # row g*Kt+k : w1[g, k, :]           width H
    alloc("tc1_b", 3)        # row g      : b1[g, :]              width H
    alloc("cheb_b", 1)       # row 0      : cheb bias             width H
    alloc("cheb_w", K * H)   # row k*H+ci : cheb_w[k, ci, :]      width H
    alloc("tc2_w", Kt * H)   # row k*H+ci : w2[:, k, ci, :] packed gate-major on lanes, width 3*C
    alloc("tc2_b", 1)        # row 0      : b2 gate-major         width 3*C
    alloc("bn_g", N)         # rows, col 0: gamma per node
    alloc("bn_b", N)         # rows, col 0: beta per node
    alloc("lin_w", C)        # (C, n_target)
    alloc("lin_b", 1)        # (1, n_target)

    blob = np.zeros((rows, width), np.float32)
    p = {k: np.asarray(v, np.float32) for k, v in params.items()}

    blob[offs["tc1_w"]:offs["tc1_w"] + 3 * Kt, :H] = p["tc1_w"].reshape(3 * Kt, H)
    blob[offs["tc1_b"]:offs["tc1_b"] + 3, :H] = p["tc1_b"].reshape(3, H)
    blob[offs["cheb_b"], :H] = p["cheb_b"].reshape(H)
    blob[offs["cheb_w"]:offs["cheb_w"] + K * H, :H] = p["cheb_w"].reshape(K * H, H)
    # fused TemporalConv2 weight: W[k*H + cin, g*C + cout] = w2[g, k, cin, cout]
    w2 = np.transpose(p["tc2_w"], (1, 2, 0, 3)).reshape(Kt * H, 3 * C)
    blob[offs["tc2_w"]:offs["tc2_w"] + Kt * H, :3 * C] = w2
    blob[offs["tc2_b"], :3 * C] = p["tc2_b"].reshape(3 * C)
    blob[offs["bn_g"]:offs["bn_g"] + N, 0] = p["bn_gamma"].reshape(N)
    blob[offs["bn_b"]:offs["bn_b"] + N, 0] = p["bn_beta"].reshape(N)
    blob[offs["lin_w"]:offs["lin_w"] + C, :n_target] = p["lin_w"]
    blob[offs["lin_b"], :n_target] = p["lin_b"].reshape(n_target)
    return jnp.asarray(blob), offs


# -----------------------------------------------------------------------------
# Fused kernel: TemporalConv1 -> Cheb+ReLU -> TemporalConv2 -> BN -> ReLU ->
#               mean over time -> Linear.   Single invocation, grid=(1,).
# -----------------------------------------------------------------------------
def _make_kernel(*, seq_len, n_nodes, hidden, out_ch, kt, k_cheb, n_target, offs):
    T, N, H, C, Kt, K, NT = seq_len, n_nodes, hidden, out_ch, kt, k_cheb, n_target
    T1 = T - Kt + 1
    T2 = T1 - Kt + 1
    o = offs
    f32 = jnp.float32

    def sig(x):  # sigmoid on the EUP tanh path (single transcendental)
        return 0.5 * (jnp.tanh(0.5 * x) + 1.0)

    def kernel(x_ref, l_ref, p_ref, o_ref):
        def pget(r0, nrows, ncols):
            v = p_ref[r0:r0 + nrows, :]
            return v if ncols == v.shape[1] else v[:, :ncols]

        # ---- Stage 1: TemporalConv #1 (Cin == 1) — VPU broadcast outer-products ----
        taps1 = [x_ref[k * N:k * N + T1 * N, :] for k in range(Kt)]   # (T1*N, 1) aligned views

        def gate1(g):
            acc = pget(o["tc1_b"] + g, 1, H)                          # (1, H)
            for k in range(Kt):
                acc = acc + taps1[k] * pget(o["tc1_w"] + g * Kt + k, 1, H)
            return acc                                                # (T1*N, H)

        p1, q1, r1 = gate1(0), gate1(1), gate1(2)
        h1f = jnp.maximum(p1 * sig(q1) + r1, 0.0)                     # (T1*N, H)

        # ---- Stage 2: ChebConv + ReLU on block-diagonal Laplacian, fused weight matmul ----
        lblk = l_ref[...]                                             # (T1*N, T1*N)
        txs = [h1f]
        if K > 1:
            tx_prev = h1f
            tx_cur = jnp.dot(lblk, h1f, preferred_element_type=f32)   # one 96-row MXU push
            txs.append(tx_cur)
            for _ in range(2, K):
                tx_next = 2.0 * jnp.dot(lblk, tx_cur, preferred_element_type=f32) - tx_prev
                txs.append(tx_next)
                tx_prev, tx_cur = tx_cur, tx_next
        tx_cat = txs[0] if K == 1 else jnp.concatenate(txs, axis=1)   # (T1*N, K*H)
        wc = pget(o["cheb_w"], K * H, H)                              # (K*H, H)
        bc = pget(o["cheb_b"], 1, H)                                  # (1, H)
        h2f = jnp.maximum(jnp.dot(tx_cat, wc, preferred_element_type=f32) + bc, 0.0)

        # ---- Stage 3: TemporalConv #2 — all Kt taps & all 3 gates in ONE matmul ----
        hcat = jnp.concatenate([h2f[k * N:k * N + T2 * N, :] for k in range(Kt)],
                               axis=1)                                # (T2*N, Kt*H)
        w2 = pget(o["tc2_w"], Kt * H, 3 * C)                          # (Kt*H, 3*C)
        b2 = pget(o["tc2_b"], 1, 3 * C)                               # (1, 3*C)
        gall = jnp.dot(hcat, w2, preferred_element_type=f32) + b2     # (T2*N, 3*C)
        p2 = gall[:, 0:C]
        q2 = gall[:, C:2 * C]
        r2 = gall[:, 2 * C:3 * C]
        h3f = jnp.maximum(p2 * sig(q2) + r2, 0.0)                     # (T2*N, C)

        # ---- Stage 4: BatchNorm2d(nodes, training stats) -> ReLU -> mean_t -> Linear ----
        # sum / sum-of-squares form: no (x - mu) materialization pass.
        blocks = [h3f[t * N:(t + 1) * N, :] for t in range(T2)]       # T2 x (N, C), aligned
        s1 = blocks[0]
        s2 = blocks[0] * blocks[0]
        for t in range(1, T2):
            s1 = s1 + blocks[t]
            s2 = s2 + blocks[t] * blocks[t]
        inv_cnt = 1.0 / float(T2 * C)
        mu = jnp.sum(s1, axis=-1, keepdims=True) * inv_cnt            # (N, 1)
        ex2 = jnp.sum(s2, axis=-1, keepdims=True) * inv_cnt           # (N, 1)
        var = ex2 - mu * mu                                           # biased (training-mode)
        gamma = pget(o["bn_g"], N, 1)                                 # (N, 1)
        beta = pget(o["bn_b"], N, 1)
        scale = gamma * jax.lax.rsqrt(var + 1e-5)
        shift = beta - mu * scale
        acc = jnp.zeros((N, C), f32)
        for t in range(T2):
            acc = acc + jnp.maximum(blocks[t] * scale + shift, 0.0)
        hm = acc * (1.0 / float(T2))                                  # (N, C): mean over time
        wl = pget(o["lin_w"], C, NT)                                  # (C, n_target)
        bl = pget(o["lin_b"], 1, NT)
        y = jnp.dot(hm, wl, preferred_element_type=f32) + bl
        o_ref[...] = y.astype(o_ref.dtype)

    return kernel


def _full_spec(shape):
    zeros = (0,) * len(shape)
    return pl.BlockSpec(shape, lambda i: zeros)


def build_forward(*, seq_len, n_nodes, hidden, out_ch, kt, k_cheb, n_target, offs):
    assert n_nodes % 8 == 0, "node count must be a multiple of 8 for aligned sublane slicing"
    T1 = seq_len - kt + 1
    kernel = _make_kernel(seq_len=seq_len, n_nodes=n_nodes, hidden=hidden, out_ch=out_ch,
                          kt=kt, k_cheb=k_cheb, n_target=n_target, offs=offs)

    def call(x, l_blk, blob):
        # x: (1, seq_len, num_nodes, 1) -- STConv layout (batch, T, N, F), batch == 1.
        x_flat = x[0].astype(jnp.float32).reshape(seq_len * n_nodes, 1)
        return pl.pallas_call(
            kernel,
            out_shape=jax.ShapeDtypeStruct((n_nodes, n_target), jnp.float32),
            grid=(1,),
            in_specs=[_full_spec(x_flat.shape),
                      _full_spec((T1 * n_nodes, T1 * n_nodes)),
                      _full_spec(blob.shape)],
            out_specs=pl.BlockSpec((n_nodes, n_target), lambda i: (0, 0)),
            compiler_params=pltpu.CompilerParams(
                dimension_semantics=("arbitrary",),
                vmem_limit_bytes=16 * 1024 * 1024),
        )(x_flat, l_blk, blob)

    return jax.jit(call)


# -----------------------------------------------------------------------------
# Glue: static graph setup, parameter init, pure-JAX reference.
# -----------------------------------------------------------------------------
def build_scaled_laplacian(edge_index, edge_weight, num_nodes):
    # PyG ChebConv with normalization='sym', lambda_max=None => lambda_max == 2, hence the
    # rescaled Laplacian is L_hat = (2/2)*(I - A_norm) - I = -A_norm.  Assumes 'sym'
    # normalization and no self-loops in edge_index (ring graph below satisfies both).
    src, dst = edge_index[0], edge_index[1]
    a = jnp.zeros((num_nodes, num_nodes), jnp.float32)
    a = a.at[dst, src].add(edge_weight.astype(jnp.float32))   # A[i, j] = weight of edge j -> i
    deg = jnp.sum(a, axis=1)
    dinv = jnp.where(deg > 0.0, jax.lax.rsqrt(deg), 0.0)
    return -(dinv[:, None] * a * dinv[None, :])


def init_params(key, n_nodes, hidden, out_ch, kt, k_cheb, n_target):
    ks = jax.random.split(key, 8)
    w = lambda k, shape: (0.1 * jax.random.normal(k, shape)).astype(jnp.float32)
    return dict(
        tc1_w=w(ks[0], (3, kt, hidden)),            # Conv2d(1, hidden, (1,kt)) x3, Cin squeezed
        tc1_b=w(ks[1], (3, 1, hidden)),
        cheb_w=w(ks[2], (k_cheb, hidden, hidden)),  # ChebConv weights (K, in, out)
        cheb_b=w(ks[3], (1, hidden)),
        tc2_w=w(ks[4], (3, kt, hidden, out_ch)),    # Conv2d(hidden, out_ch, (1,kt)) x3
        tc2_b=w(ks[5], (3, 1, out_ch)),
        bn_gamma=jnp.ones((n_nodes, 1), jnp.float32),
        bn_beta=jnp.zeros((n_nodes, 1), jnp.float32),
        lin_w=w(ks[6], (out_ch, n_target)),         # Linear stored as (in, out)
        lin_b=w(ks[7], (1, n_target)),
    )


# ---- pure-JAX reference (sanity check only) ----------------------------------
def _temporal_conv_ref(h, w, b):
    Kt = w.shape[1]
    T_out = h.shape[0] - Kt + 1

    def gate(g):
        out = jnp.zeros((T_out, h.shape[1], w.shape[3]), jnp.float32)
        for k in range(Kt):
            out = out + jnp.einsum("tnc,co->tno", h[k:k + T_out], w[g, k])
        return out + b[g]

    p, q, r = gate(0), gate(1), gate(2)
    return jnp.maximum(p * jax.nn.sigmoid(q) + r, 0.0)


def _cheb_relu_ref(h, l_hat, w, b):
    K = w.shape[0]
    tx0 = h
    out = jnp.einsum("tnc,co->tno", tx0, w[0])
    if K > 1:
        tx1 = jnp.einsum("nm,tmc->tnc", l_hat, tx0)
        out = out + jnp.einsum("tnc,co->tno", tx1, w[1])
        for k in range(2, K):
            tx2 = 2.0 * jnp.einsum("nm,tmc->tnc", l_hat, tx1) - tx0
            out = out + jnp.einsum("tnc,co->tno", tx2, w[k])
            tx0, tx1 = tx1, tx2
    return jnp.maximum(out + b, 0.0)


@jax.jit
def _reference_forward(x, l_hat, params):
    xs = x[0].astype(jnp.float32)                                     # (T, N, 1)
    h = _temporal_conv_ref(xs, params["tc1_w"][:, :, None, :], params["tc1_b"])
    h = _cheb_relu_ref(h, l_hat, params["cheb_w"], params["cheb_b"])
    h = _temporal_conv_ref(h, params["tc2_w"], params["tc2_b"])
    mu = jnp.mean(h, axis=(0, 2), keepdims=True)
    var = jnp.mean((h - mu) ** 2, axis=(0, 2), keepdims=True)
    hbn = (h - mu) * jax.lax.rsqrt(var + 1e-5) * params["bn_gamma"][None] \
        + params["bn_beta"][None]
    hm = jnp.mean(jnp.maximum(hbn, 0.0), axis=0)
    return hm @ params["lin_w"] + params["lin_b"]


if __name__ == "__main__":
    NODE_COUNT = 16
    NODE_FEATURES = 1       # STConv is built with in_channels=1
    SEQ_LEN = 8
    HIDDEN = 32
    OUT_CHANNELS = 8
    KT = 3                  # temporal kernel_size
    K_CHEB = 2
    N_TARGET = 4
    T1 = SEQ_LEN - KT + 1

    key = jax.random.PRNGKey(0)
    k_x, k_p = jax.random.split(key)

    # input signal: (batch=1, seq, nodes, features=1)
    x = jax.random.normal(k_x, (1, SEQ_LEN, NODE_COUNT, NODE_FEATURES), jnp.float32)

    # undirected ring graph (static)
    src = np.arange(NODE_COUNT)
    dst = (src + 1) % NODE_COUNT
    edge_index = jnp.asarray(
        np.stack([np.concatenate([src, dst]), np.concatenate([dst, src])]), jnp.int32)
    edge_weight = jnp.ones((2 * NODE_COUNT,), jnp.float32)

    params = init_params(k_p, NODE_COUNT, HIDDEN, OUT_CHANNELS, KT, K_CHEB, N_TARGET)

    # Static graph => dense scaled Laplacian and its block-diagonal kron built ONCE on the host.
    l_hat = jax.block_until_ready(build_scaled_laplacian(edge_index, edge_weight, NODE_COUNT))
    l_blk = jax.block_until_ready(jnp.kron(jnp.eye(T1, dtype=jnp.float32), l_hat))

    # Parameters packed ONCE into a single flat blob (3 kernel inputs total).
    blob, offs = pack_params(params, n_nodes=NODE_COUNT, hidden=HIDDEN, out_ch=OUT_CHANNELS,
                             kt=KT, k_cheb=K_CHEB, n_target=N_TARGET)
    blob = jax.block_until_ready(blob)

    forward = build_forward(seq_len=SEQ_LEN, n_nodes=NODE_COUNT, hidden=HIDDEN,
                            out_ch=OUT_CHANNELS, kt=KT, k_cheb=K_CHEB,
                            n_target=N_TARGET, offs=offs)

    out = jax.block_until_ready(forward(x, l_blk, blob))
    assert out.shape == (NODE_COUNT, N_TARGET), out.shape
    assert bool(jnp.all(jnp.isfinite(out)))

    # sanity check vs a pure-JAX reference (both use default TPU matmul precision)
    ref = jax.block_until_ready(_reference_forward(x, l_hat, params))
    np.testing.assert_allclose(np.asarray(out), np.asarray(ref), rtol=2e-2, atol=2e-3)

    print("KERNEL_OK")
</pallas_src>

<mosaic_0001>
module attributes {stable_mosaic.version = 11 : i64} {
  func.func @kernel(%arg0: i32, %arg1: memref<128x1xf32, #tpu.memory_space<vmem>>, %arg2: memref<96x96xf32, #tpu.memory_space<vmem>>, %arg3: memref<248x32xf32, #tpu.memory_space<vmem>>, %arg4: memref<16x4xf32, #tpu.memory_space<vmem>>) attributes {dimension_semantics = [#tpu.dimension_semantics<arbitrary>], iteration_bounds = array<i64: 1>, scalar_prefetch = 0 : i64, scratch_operands = 0 : i64, tpu.core_type = #tpu.core_type<tc>, window_params = [{pipeline_mode = #tpu.pipeline_mode<synchronous>, transform_indices = @transform_0, window_bounds = array<i64: 128, 1>}, {pipeline_mode = #tpu.pipeline_mode<synchronous>, transform_indices = @transform_1, window_bounds = array<i64: 96, 96>}, {pipeline_mode = #tpu.pipeline_mode<synchronous>, transform_indices = @transform_2, window_bounds = array<i64: 248, 32>}, {pipeline_mode = #tpu.pipeline_mode<synchronous>, transform_indices = @transform_3, window_bounds = array<i64: 16, 4>}]} {
    %c0 = arith.constant 0 : index
    %c0_0 = arith.constant 0 : index
    %0 = vector.load %arg1[%c0, %c0_0] : memref<128x1xf32, #tpu.memory_space<vmem>>, vector<96x1xf32>
    %c16 = arith.constant 16 : index
    %c0_1 = arith.constant 0 : index
    %1 = vector.load %arg1[%c16, %c0_1] : memref<128x1xf32, #tpu.memory_space<vmem>>, vector<96x1xf32>
    %c32 = arith.constant 32 : index
    %c0_2 = arith.constant 0 : index
    %2 = vector.load %arg1[%c32, %c0_2] : memref<128x1xf32, #tpu.memory_space<vmem>>, vector<96x1xf32>
    %c16_3 = arith.constant 16 : index
    %c0_4 = arith.constant 0 : index
    %3 = vector.load %arg3[%c16_3, %c0_4] : memref<248x32xf32, #tpu.memory_space<vmem>>, vector<1x32xf32>
    %c0_5 = arith.constant 0 : index
    %c0_6 = arith.constant 0 : index
    %4 = vector.load %arg3[%c0_5, %c0_6] : memref<248x32xf32, #tpu.memory_space<vmem>>, vector<1x32xf32>
    %5 = vector.broadcast %0 : vector<96x1xf32> to vector<96x32xf32>
    %6 = vector.broadcast %4 : vector<1x32xf32> to vector<96x32xf32>
    %7 = arith.mulf %5, %6 : vector<96x32xf32>
    %8 = vector.broadcast %3 : vector<1x32xf32> to vector<96x32xf32>
    %9 = arith.addf %8, %7 : vector<96x32xf32>
    %c1 = arith.constant 1 : index
    %c0_7 = arith.constant 0 : index
    %10 = vector.load %arg3[%c1, %c0_7] : memref<248x32xf32, #tpu.memory_space<vmem>>, vector<1x32xf32>
    %11 = vector.broadcast %1 : vector<96x1xf32> to vector<96x32xf32>
    %12 = vector.broadcast %10 : vector<1x32xf32> to vector<96x32xf32>
    %13 = arith.mulf %11, %12 : vector<96x32xf32>
    %14 = arith.addf %9, %13 : vector<96x32xf32>
    %c2 = arith.constant 2 : index
    %c0_8 = arith.constant 0 : index
    %15 = vector.load %arg3[%c2, %c0_8] : memref<248x32xf32, #tpu.memory_space<vmem>>, vector<1x32xf32>
    %16 = vector.broadcast %2 : vector<96x1xf32> to vector<96x32xf32>
    %17 = vector.broadcast %15 : vector<1x32xf32> to vector<96x32xf32>
    %18 = arith.mulf %16, %17 : vector<96x32xf32>
    %19 = arith.addf %14, %18 : vector<96x32xf32>
    %c17 = arith.constant 17 : index
    %c0_9 = arith.constant 0 : index
    %20 = vector.load %arg3[%c17, %c0_9] : memref<248x32xf32, #tpu.memory_space<vmem>>, vector<1x32xf32>
    %c3 = arith.constant 3 : index
    %c0_10 = arith.constant 0 : index
    %21 = vector.load %arg3[%c3, %c0_10] : memref<248x32xf32, #tpu.memory_space<vmem>>, vector<1x32xf32>
    %22 = vector.broadcast %0 : vector<96x1xf32> to vector<96x32xf32>
    %23 = vector.broadcast %21 : vector<1x32xf32> to vector<96x32xf32>
    %24 = arith.mulf %22, %23 : vector<96x32xf32>
    %25 = vector.broadcast %20 : vector<1x32xf32> to vector<96x32xf32>
    %26 = arith.addf %25, %24 : vector<96x32xf32>
    %c4 = arith.constant 4 : index
    %c0_11 = arith.constant 0 : index
    %27 = vector.load %arg3[%c4, %c0_11] : memref<248x32xf32, #tpu.memory_space<vmem>>, vector<1x32xf32>
    %28 = vector.broadcast %1 : vector<96x1xf32> to vector<96x32xf32>
    %29 = vector.broadcast %27 : vector<1x32xf32> to vector<96x32xf32>
    %30 = arith.mulf %28, %29 : vector<96x32xf32>
    %31 = arith.addf %26, %30 : vector<96x32xf32>
    %c5 = arith.constant 5 : index
    %c0_12 = arith.constant 0 : index
    %32 = vector.load %arg3[%c5, %c0_12] : memref<248x32xf32, #tpu.memory_space<vmem>>, vector<1x32xf32>
    %33 = vector.broadcast %2 : vector<96x1xf32> to vector<96x32xf32>
    %34 = vector.broadcast %32 : vector<1x32xf32> to vector<96x32xf32>
    %35 = arith.mulf %33, %34 : vector<96x32xf32>
    %36 = arith.addf %31, %35 : vector<96x32xf32>
    %c18 = arith.constant 18 : index
    %c0_13 = arith.constant 0 : index
    %37 = vector.load %arg3[%c18, %c0_13] : memref<248x32xf32, #tpu.memory_space<vmem>>, vector<1x32xf32>
    %c6 = arith.constant 6 : index
    %c0_14 = arith.constant 0 : index
    %38 = vector.load %arg3[%c6, %c0_14] : memref<248x32xf32, #tpu.memory_space<vmem>>, vector<1x32xf32>
    %39 = vector.broadcast %0 : vector<96x1xf32> to vector<96x32xf32>
    %40 = vector.broadcast %38 : vector<1x32xf32> to vector<96x32xf32>
    %41 = arith.mulf %39, %40 : vector<96x32xf32>
    %42 = vector.broadcast %37 : vector<1x32xf32> to vector<96x32xf32>
    %43 = arith.addf %42, %41 : vector<96x32xf32>
    %c7 = arith.constant 7 : index
    %c0_15 = arith.constant 0 : index
    %44 = vector.load %arg3[%c7, %c0_15] : memref<248x32xf32, #tpu.memory_space<vmem>>, vector<1x32xf32>
    %45 = vector.broadcast %1 : vector<96x1xf32> to vector<96x32xf32>
    %46 = vector.broadcast %44 : vector<1x32xf32> to vector<96x32xf32>
    %47 = arith.mulf %45, %46 : vector<96x32xf32>
    %48 = arith.addf %43, %47 : vector<96x32xf32>
    %c8 = arith.constant 8 : index
    %c0_16 = arith.constant 0 : index
    %49 = vector.load %arg3[%c8, %c0_16] : memref<248x32xf32, #tpu.memory_space<vmem>>, vector<1x32xf32>
    %50 = vector.broadcast %2 : vector<96x1xf32> to vector<96x32xf32>
    %51 = vector.broadcast %49 : vector<1x32xf32> to vector<96x32xf32>
    %52 = arith.mulf %50, %51 : vector<96x32xf32>
    %53 = arith.addf %48, %52 : vector<96x32xf32>
    %cst = arith.constant 5.000000e-01 : f32
    %54 = vector.broadcast %cst : f32 to vector<96x32xf32>
    %55 = arith.mulf %54, %36 : vector<96x32xf32>
    %56 = math.tanh %55 : vector<96x32xf32>
    %cst_17 = arith.constant 1.000000e+00 : f32
    %57 = vector.broadcast %cst_17 : f32 to vector<96x32xf32>
    %58 = arith.addf %56, %57 : vector<96x32xf32>
    %cst_18 = arith.constant 5.000000e-01 : f32
    %59 = vector.broadcast %cst_18 : f32 to vector<96x32xf32>
    %60 = arith.mulf %59, %58 : vector<96x32xf32>
    %61 = arith.mulf %19, %60 : vector<96x32xf32>
    %62 = arith.addf %61, %53 : vector<96x32xf32>
    %cst_19 = arith.constant 0.000000e+00 : f32
    %63 = vector.broadcast %cst_19 : f32 to vector<96x32xf32>
    %64 = arith.maximumf %62, %63 : vector<96x32xf32>
    %c0_20 = arith.constant 0 : index
    %c0_21 = arith.constant 0 : index
    %65 = vector.load %arg2[%c0_20, %c0_21] : memref<96x96xf32, #tpu.memory_space<vmem>>, vector<96x96xf32>
    %cst_22 = arith.constant dense<0.000000e+00> : vector<96x32xf32>
    %66 = tpu.matmul %65, %64, %cst_22 {dimension_numbers = #tpu.dot_dimension_numbers<[1], [0], [0], [1], [0, 0, 1, 1], [], []>} : vector<96x96xf32>, vector<96x32xf32>, vector<96x32xf32> -> vector<96x32xf32>
    %67 = tpu.concatenate %64, %66 in 1 : vector<96x32xf32>, vector<96x32xf32> -> vector<96x64xf32>
    %c32_23 = arith.constant 32 : index
    %c0_24 = arith.constant 0 : index
    %68 = vector.load %arg3[%c32_23, %c0_24] : memref<248x32xf32, #tpu.memory_space<vmem>>, vector<64x32xf32>
    %c24 = arith.constant 24 : index
    %c0_25 = arith.constant 0 : index
    %69 = vector.load %arg3[%c24, %c0_25] : memref<248x32xf32, #tpu.memory_space<vmem>>, vector<1x32xf32>
    %cst_26 = arith.constant dense<0.000000e+00> : vector<96x32xf32>
    %70 = tpu.matmul %67, %68, %cst_26 {dimension_numbers = #tpu.dot_dimension_numbers<[1], [0], [0], [1], [0, 0, 1, 1], [], []>} : vector<96x64xf32>, vector<64x32xf32>, vector<96x32xf32> -> vector<96x32xf32>
    %71 = vector.broadcast %69 : vector<1x32xf32> to vector<96x32xf32>
    %72 = arith.addf %70, %71 : vector<96x32xf32>
    %cst_27 = arith.constant 0.000000e+00 : f32
    %73 = vector.broadcast %cst_27 : f32 to vector<96x32xf32>
    %74 = arith.maximumf %72, %73 : vector<96x32xf32>
    %75 = vector.extract_strided_slice %74 {offsets = [0, 0], sizes = [64, 32], strides = [1, 1]} : vector<96x32xf32> to vector<64x32xf32>
    %76 = vector.extract_strided_slice %74 {offsets = [16, 0], sizes = [64, 32], strides = [1, 1]} : vector<96x32xf32> to vector<64x32xf32>
    %77 = vector.extract_strided_slice %74 {offsets = [32, 0], sizes = [64, 32], strides = [1, 1]} : vector<96x32xf32> to vector<64x32xf32>
    %78 = tpu.concatenate %75, %76, %77 in 1 : vector<64x32xf32>, vector<64x32xf32>, vector<64x32xf32> -> vector<64x96xf32>
    %c96 = arith.constant 96 : index
    %c0_28 = arith.constant 0 : index
    %79 = vector.load %arg3[%c96, %c0_28] : memref<248x32xf32, #tpu.memory_space<vmem>>, vector<96x32xf32>
    %80 = vector.extract_strided_slice %79 {offsets = [0, 0], sizes = [96, 24], strides = [1, 1]} : vector<96x32xf32> to vector<96x24xf32>
    %c192 = arith.constant 192 : index
    %c0_29 = arith.constant 0 : index
    %81 = vector.load %arg3[%c192, %c0_29] : memref<248x32xf32, #tpu.memory_space<vmem>>, vector<1x32xf32>
    %82 = vector.extract_strided_slice %81 {offsets = [0, 0], sizes = [1, 24], strides = [1, 1]} : vector<1x32xf32> to vector<1x24xf32>
    %cst_30 = arith.constant dense<0.000000e+00> : vector<64x24xf32>
    %83 = tpu.matmul %78, %80, %cst_30 {dimension_numbers = #tpu.dot_dimension_numbers<[1], [0], [0], [1], [0, 0, 1, 1], [], []>} : vector<64x96xf32>, vector<96x24xf32>, vector<64x24xf32> -> vector<64x24xf32>
    %84 = vector.broadcast %82 : vector<1x24xf32> to vector<64x24xf32>
    %85 = arith.addf %83, %84 : vector<64x24xf32>
    %86 = vector.extract_strided_slice %85 {offsets = [0, 0], sizes = [64, 8], strides = [1, 1]} : vector<64x24xf32> to vector<64x8xf32>
    %87 = vector.extract_strided_slice %85 {offsets = [0, 8], sizes = [64, 8], strides = [1, 1]} : vector<64x24xf32> to vector<64x8xf32>
    %88 = vector.extract_strided_slice %85 {offsets = [0, 16], sizes = [64, 8], strides = [1, 1]} : vector<64x24xf32> to vector<64x8xf32>
    %cst_31 = arith.constant 5.000000e-01 : f32
    %89 = vector.broadcast %cst_31 : f32 to vector<64x8xf32>
    %90 = arith.mulf %89, %87 : vector<64x8xf32>
    %91 = math.tanh %90 : vector<64x8xf32>
    %cst_32 = arith.constant 1.000000e+00 : f32
    %92 = vector.broadcast %cst_32 : f32 to vector<64x8xf32>
    %93 = arith.addf %91, %92 : vector<64x8xf32>
    %cst_33 = arith.constant 5.000000e-01 : f32
    %94 = vector.broadcast %cst_33 : f32 to vector<64x8xf32>
    %95 = arith.mulf %94, %93 : vector<64x8xf32>
    %96 = arith.mulf %86, %95 : vector<64x8xf32>
    %97 = arith.addf %96, %88 : vector<64x8xf32>
    %cst_34 = arith.constant 0.000000e+00 : f32
    %98 = vector.broadcast %cst_34 : f32 to vector<64x8xf32>
    %99 = arith.maximumf %97, %98 : vector<64x8xf32>
    %100 = vector.extract_strided_slice %99 {offsets = [0, 0], sizes = [16, 8], strides = [1, 1]} : vector<64x8xf32> to vector<16x8xf32>
    %101 = vector.extract_strided_slice %99 {offsets = [16, 0], sizes = [16, 8], strides = [1, 1]} : vector<64x8xf32> to vector<16x8xf32>
    %102 = vector.extract_strided_slice %99 {offsets = [32, 0], sizes = [16, 8], strides = [1, 1]} : vector<64x8xf32> to vector<16x8xf32>
    %103 = vector.extract_strided_slice %99 {offsets = [48, 0], sizes = [16, 8], strides = [1, 1]} : vector<64x8xf32> to vector<16x8xf32>
    %104 = arith.mulf %100, %100 : vector<16x8xf32>
    %105 = arith.addf %100, %101 : vector<16x8xf32>
    %106 = arith.mulf %101, %101 : vector<16x8xf32>
    %107 = arith.addf %104, %106 : vector<16x8xf32>
    %108 = arith.addf %105, %102 : vector<16x8xf32>
    %109 = arith.mulf %102, %102 : vector<16x8xf32>
    %110 = arith.addf %107, %109 : vector<16x8xf32>
    %111 = arith.addf %108, %103 : vector<16x8xf32>
    %112 = arith.mulf %103, %103 : vector<16x8xf32>
    %113 = arith.addf %110, %112 : vector<16x8xf32>
    %cst_35 = arith.constant dense<0.000000e+00> : vector<16xf32>
    %114 = vector.multi_reduction <add>, %111, %cst_35 [1] : vector<16x8xf32> to vector<16xf32>
    %115 = vector.shape_cast %114 : vector<16xf32> to vector<16x1xf32>
    %cst_36 = arith.constant 3.125000e-02 : f32
    %116 = vector.broadcast %cst_36 : f32 to vector<16x1xf32>
    %117 = arith.mulf %115, %116 : vector<16x1xf32>
    %cst_37 = arith.constant dense<0.000000e+00> : vector<16xf32>
    %118 = vector.multi_reduction <add>, %113, %cst_37 [1] : vector<16x8xf32> to vector<16xf32>
    %119 = vector.shape_cast %118 : vector<16xf32> to vector<16x1xf32>
    %cst_38 = arith.constant 3.125000e-02 : f32
    %120 = vector.broadcast %cst_38 : f32 to vector<16x1xf32>
    %121 = arith.mulf %119, %120 : vector<16x1xf32>
    %122 = arith.mulf %117, %117 : vector<16x1xf32>
    %123 = arith.subf %121, %122 : vector<16x1xf32>
    %c200 = arith.constant 200 : index
    %c0_39 = arith.constant 0 : index
    %124 = vector.load %arg3[%c200, %c0_39] : memref<248x32xf32, #tpu.memory_space<vmem>>, vector<16x32xf32>
    %125 = vector.extract_strided_slice %124 {offsets = [0, 0], sizes = [16, 1], strides = [1, 1]} : vector<16x32xf32> to vector<16x1xf32>
    %c216 = arith.constant 216 : index
    %c0_40 = arith.constant 0 : index
    %126 = vector.load %arg3[%c216, %c0_40] : memref<248x32xf32, #tpu.memory_space<vmem>>, vector<16x32xf32>
    %127 = vector.extract_strided_slice %126 {offsets = [0, 0], sizes = [16, 1], strides = [1, 1]} : vector<16x32xf32> to vector<16x1xf32>
    %cst_41 = arith.constant 9.99999974E-6 : f32
    %128 = vector.broadcast %cst_41 : f32 to vector<16x1xf32>
    %129 = arith.addf %123, %128 : vector<16x1xf32>
    %130 = math.rsqrt %129 : vector<16x1xf32>
    %131 = arith.mulf %125, %130 : vector<16x1xf32>
    %132 = arith.mulf %117, %131 : vector<16x1xf32>
    %133 = arith.subf %127, %132 : vector<16x1xf32>
    %cst_42 = arith.constant 0.000000e+00 : f32
    %134 = vector.broadcast %cst_42 : f32 to vector<16x8xf32>
    %135 = vector.broadcast %131 : vector<16x1xf32> to vector<16x8xf32>
    %136 = arith.mulf %100, %135 : vector<16x8xf32>
    %137 = vector.broadcast %133 : vector<16x1xf32> to vector<16x8xf32>
    %138 = arith.addf %136, %137 : vector<16x8xf32>
    %cst_43 = arith.constant 0.000000e+00 : f32
    %139 = vector.broadcast %cst_43 : f32 to vector<16x8xf32>
    %140 = arith.maximumf %138, %139 : vector<16x8xf32>
    %141 = arith.addf %134, %140 : vector<16x8xf32>
    %142 = vector.broadcast %131 : vector<16x1xf32> to vector<16x8xf32>
    %143 = arith.mulf %101, %142 : vector<16x8xf32>
    %144 = vector.broadcast %133 : vector<16x1xf32> to vector<16x8xf32>
    %145 = arith.addf %143, %144 : vector<16x8xf32>
    %cst_44 = arith.constant 0.000000e+00 : f32
    %146 = vector.broadcast %cst_44 : f32 to vector<16x8xf32>
    %147 = arith.maximumf %145, %146 : vector<16x8xf32>
    %148 = arith.addf %141, %147 : vector<16x8xf32>
    %149 = vector.broadcast %131 : vector<16x1xf32> to vector<16x8xf32>
    %150 = arith.mulf %102, %149 : vector<16x8xf32>
    %151 = vector.broadcast %133 : vector<16x1xf32> to vector<16x8xf32>
    %152 = arith.addf %150, %151 : vector<16x8xf32>
    %cst_45 = arith.constant 0.000000e+00 : f32
    %153 = vector.broadcast %cst_45 : f32 to vector<16x8xf32>
    %154 = arith.maximumf %152, %153 : vector<16x8xf32>
    %155 = arith.addf %148, %154 : vector<16x8xf32>
    %156 = vector.broadcast %131 : vector<16x1xf32> to vector<16x8xf32>
    %157 = arith.mulf %103, %156 : vector<16x8xf32>
    %158 = vector.broadcast %133 : vector<16x1xf32> to vector<16x8xf32>
    %159 = arith.addf %157, %158 : vector<16x8xf32>
    %cst_46 = arith.constant 0.000000e+00 : f32
    %160 = vector.broadcast %cst_46 : f32 to vector<16x8xf32>
    %161 = arith.maximumf %159, %160 : vector<16x8xf32>
    %162 = arith.addf %155, %161 : vector<16x8xf32>
    %cst_47 = arith.constant 2.500000e-01 : f32
    %163 = vector.broadcast %cst_47 : f32 to vector<16x8xf32>
    %164 = arith.mulf %162, %163 : vector<16x8xf32>
    %c232 = arith.constant 232 : index
    %c0_48 = arith.constant 0 : index
    %165 = vector.load %arg3[%c232, %c0_48] : memref<248x32xf32, #tpu.memory_space<vmem>>, vector<8x32xf32>
    %166 = vector.extract_strided_slice %165 {offsets = [0, 0], sizes = [8, 4], strides = [1, 1]} : vector<8x32xf32> to vector<8x4xf32>
    %c240 = arith.constant 240 : index
    %c0_49 = arith.constant 0 : index
    %167 = vector.load %arg3[%c240, %c0_49] : memref<248x32xf32, #tpu.memory_space<vmem>>, vector<1x32xf32>
    %168 = vector.extract_strided_slice %167 {offsets = [0, 0], sizes = [1, 4], strides = [1, 1]} : vector<1x32xf32> to vector<1x4xf32>
    %cst_50 = arith.constant dense<0.000000e+00> : vector<16x4xf32>
    %169 = tpu.matmul %164, %166, %cst_50 {dimension_numbers = #tpu.dot_dimension_numbers<[1], [0], [0], [1], [0, 0, 1, 1], [], []>} : vector<16x8xf32>, vector<8x4xf32>, vector<16x4xf32> -> vector<16x4xf32>
    %170 = vector.broadcast %168 : vector<1x4xf32> to vector<16x4xf32>
    %171 = arith.addf %169, %170 : vector<16x4xf32>
    %c0_51 = arith.constant 0 : index
    %c0_52 = arith.constant 0 : index
    %172 = vector.load %arg4[%c0_51, %c0_52] : memref<16x4xf32, #tpu.memory_space<vmem>>, vector<16x4xf32>
    tpu.vector_store %arg4[%c0_51, %c0_52], %171 {strides = array<i32>} : memref<16x4xf32, #tpu.memory_space<vmem>>, vector<16x4xf32>,
    return
  }
  func.func @transform_0(%arg0: i32) -> (i32, i32) {
    %c0_i32 = arith.constant 0 : i32
    %c0_i32_0 = arith.constant 0 : i32
    %c0_i32_1 = arith.constant 0 : i32
    return %c0_i32, %c0_i32_0 : i32, i32
  }
  func.func @transform_1(%arg0: i32) -> (i32, i32) {
    %c0_i32 = arith.constant 0 : i32
    %c0_i32_0 = arith.constant 0 : i32
    %c0_i32_1 = arith.constant 0 : i32
    return %c0_i32, %c0_i32_0 : i32, i32
  }
  func.func @transform_2(%arg0: i32) -> (i32, i32) {
    %c0_i32 = arith.constant 0 : i32
    %c0_i32_0 = arith.constant 0 : i32
    %c0_i32_1 = arith.constant 0 : i32
    return %c0_i32, %c0_i32_0 : i32, i32
  }
  func.func @transform_3(%arg0: i32) -> (i32, i32) {
    %c0_i32 = arith.constant 0 : i32
    %c0_i32_0 = arith.constant 0 : i32
    %c0_i32_1 = arith.constant 0 : i32
    return %c0_i32, %c0_i32_0 : i32, i32
  }
}

</mosaic_0001>

<bundles_post_ra>
// kernel: squeeze.0
= control target key start
LH: loop header
LB: loop body
LE: loop exit
PB: predicated region body
PF: predicated region fallthrough
CT: control target
= control target key end

     0   :  { %s264_s8 = smov 127   ;;  %s265_s9 = smov 123   ;;  %vm3_vm0 = vcmask 7168   ;;  %s547_s0 = inlined_call_operand.vmem [shape: f32[8,16], index: 0, kind: input, shape index: {}]   ;;  %s548_s1 = inlined_call_operand.vmem [shape: f32[128,1], index: 1, kind: output, shape index: {}]  }
   0x1   :  { %v32_v0 = vld [vmem:[%s547_s0] sm:$0xff]   ;;  %s263_s0 = smov 125   ;;  %s266_s18 = smov 124  }
   0x2   :  { %33 = vrot.lane.b32.xlu1 %v32_v0, %s263_s0  ;;  %9 = vrot.lane.b32.xlu0 %v32_v0, %s264_s8  ;;  %4 = vst.msk [vmem:[%s548_s1] ss:$16 sm:$0x3] %vm3_vm0, %v32_v0   ;;  %s267_s19 = smov 126   ;;  %s268_s20 = smov 122  }
   0x3   :  { %57 = vrot.lane.b32.xlu2 %v32_v0, %s265_s9  ;;  %5 = vst.msk [vmem:[%s548_s1] ss:$16 sm:$0xc] %vm3_vm0, %v32_v0   ;;  %s269_s21 = smov 120   ;;  %s270_s22 = smov 121  }
   0x4   :  { %6 = vst.msk [vmem:[%s548_s1] ss:$16 sm:$0x30] %vm3_vm0, %v32_v0   ;;  %s271_s23 = smov 119   ;;  %s272_s24 = smov 117  }
   0x5   :  { %7 = vst.msk [vmem:[%s548_s1] ss:$16 sm:$0xc0] %vm3_vm0, %v32_v0   ;;  %s273_s25 = smov 118   ;;  %s274_s26 = smov 116  }
   0x6   :  { %s275_s27 = smov 114   ;;  %s276_s28 = smov 115  }
   0x7   :  { %s277_s29 = smov 113  }
   0xa   :  { %45 = vrot.lane.b32.xlu1 %v32_v0, %s266_s18  ;;  %21 = vrot.lane.b32.xlu0 %v32_v0, %s267_s19 }
   0xb   :  { %69 = vrot.lane.b32.xlu2 %v32_v0, %s268_s20 }
  0x12   :  { %93 = vrot.lane.b32.xlu1 %v32_v0, %s269_s21  ;;  %81 = vrot.lane.b32.xlu0 %v32_v0, %s270_s22 }
  0x13   :  { %105 = vrot.lane.b32.xlu2 %v32_v0, %s271_s23 }
  0x1a   :  { %129 = vrot.lane.b32.xlu1 %v32_v0, %s272_s24  ;;  %117 = vrot.lane.b32.xlu0 %v32_v0, %s273_s25 }
  0x1b   :  { %141 = vrot.lane.b32.xlu2 %v32_v0, %s274_s26 }
  0x22   :  { %165 = vrot.lane.b32.xlu1 %v32_v0, %s275_s27  ;;  %153 = vrot.lane.b32.xlu0 %v32_v0, %s276_s28 }
  0x23   :  { %177 = vrot.lane.b32.xlu2 %v32_v0, %s277_s29 }
  0x5d   :  { %v58_v1 = vpop.permute.xlu2 %57  }
  0x5e   :  { %204 = vst.msk [vmem:[%s548_s1 + $0x5] ss:$16 sm:$0x3] %vm3_vm0, %v58_v1  }
  0x5f   :  { %205 = vst.msk [vmem:[%s548_s1 + $0x5] ss:$16 sm:$0xc] %vm3_vm0, %v58_v1  }
  0x60   :  { %206 = vst.msk [vmem:[%s548_s1 + $0x5] ss:$16 sm:$0x30] %vm3_vm0, %v58_v1  }
  0x61   :  { %207 = vst.msk [vmem:[%s548_s1 + $0x5] ss:$16 sm:$0xc0] %vm3_vm0, %v58_v1  }
  0x65   :  { %v70_v2 = vpop.permute.xlu2 %69  }
  0x66   :  { %208 = vst.msk [vmem:[%s548_s1 + $0x6] ss:$16 sm:$0x3] %vm3_vm0, %v70_v2  }
  0x67   :  { %209 = vst.msk [vmem:[%s548_s1 + $0x6] ss:$16 sm:$0xc] %vm3_vm0, %v70_v2  }
  0x68   :  { %210 = vst.msk [vmem:[%s548_s1 + $0x6] ss:$16 sm:$0x30] %vm3_vm0, %v70_v2  }
  0x69   :  { %211 = vst.msk [vmem:[%s548_s1 + $0x6] ss:$16 sm:$0xc0] %vm3_vm0, %v70_v2  }
  0x6d   :  { %v106_v3 = vpop.permute.xlu2 %105  }
  0x6e   :  { %220 = vst.msk [vmem:[%s548_s1 + $0x9] ss:$16 sm:$0x3] %vm3_vm0, %v106_v3  }
  0x6f   :  { %221 = vst.msk [vmem:[%s548_s1 + $0x9] ss:$16 sm:$0xc] %vm3_vm0, %v106_v3  }
  0x70   :  { %222 = vst.msk [vmem:[%s548_s1 + $0x9] ss:$16 sm:$0x30] %vm3_vm0, %v106_v3  }
  0x71   :  { %223 = vst.msk [vmem:[%s548_s1 + $0x9] ss:$16 sm:$0xc0] %vm3_vm0, %v106_v3  }
  0x74   :  { %v34_v4 = vpop.permute.xlu1 %33   ;;  %v10_v5 = vpop.permute.xlu0 %9  }
  0x75   :  { %196 = vst.msk [vmem:[%s548_s1 + $0x3] ss:$16 sm:$0x3] %vm3_vm0, %v34_v4   ;;  %v142_v6 = vpop.permute.xlu2 %141  }
  0x76   :  { %197 = vst.msk [vmem:[%s548_s1 + $0x3] ss:$16 sm:$0xc] %vm3_vm0, %v34_v4  }
  0x77   :  { %198 = vst.msk [vmem:[%s548_s1 + $0x3] ss:$16 sm:$0x30] %vm3_vm0, %v34_v4  }
  0x78   :  { %199 = vst.msk [vmem:[%s548_s1 + $0x3] ss:$16 sm:$0xc0] %vm3_vm0, %v34_v4  }
  0x79   :  { %188 = vst.msk [vmem:[%s548_s1 + $0x1] ss:$16 sm:$0x3] %vm3_vm0, %v10_v5  }
  0x7a   :  { %189 = vst.msk [vmem:[%s548_s1 + $0x1] ss:$16 sm:$0xc] %vm3_vm0, %v10_v5  }
  0x7b   :  { %190 = vst.msk [vmem:[%s548_s1 + $0x1] ss:$16 sm:$0x30] %vm3_vm0, %v10_v5  }
  0x7c   :  { %191 = vst.msk [vmem:[%s548_s1 + $0x1] ss:$16 sm:$0xc0] %vm3_vm0, %v10_v5   ;;  %v46_v7 = vpop.permute.xlu1 %45   ;;  %v22_v8 = vpop.permute.xlu0 %21  }
  0x7d   :  { %200 = vst.msk [vmem:[%s548_s1 + $0x4] ss:$16 sm:$0x3] %vm3_vm0, %v46_v7   ;;  %v178_v9 = vpop.permute.xlu2 %177  }
  0x7e   :  { %201 = vst.msk [vmem:[%s548_s1 + $0x4] ss:$16 sm:$0xc] %vm3_vm0, %v46_v7  }
  0x7f   :  { %202 = vst.msk [vmem:[%s548_s1 + $0x4] ss:$16 sm:$0x30] %vm3_vm0, %v46_v7  }
  0x80   :  { %203 = vst.msk [vmem:[%s548_s1 + $0x4] ss:$16 sm:$0xc0] %vm3_vm0, %v46_v7  }
  0x81   :  { %192 = vst.msk [vmem:[%s548_s1 + $0x2] ss:$16 sm:$0x3] %vm3_vm0, %v22_v8  }
  0x82   :  { %193 = vst.msk [vmem:[%s548_s1 + $0x2] ss:$16 sm:$0xc] %vm3_vm0, %v22_v8  }
  0x83   :  { %194 = vst.msk [vmem:[%s548_s1 + $0x2] ss:$16 sm:$0x30] %vm3_vm0, %v22_v8  }
  0x84   :  { %195 = vst.msk [vmem:[%s548_s1 + $0x2] ss:$16 sm:$0xc0] %vm3_vm0, %v22_v8   ;;  %v94_v10 = vpop.permute.xlu1 %93   ;;  %v82_v11 = vpop.permute.xlu0 %81  }
  0x85   :  { %216 = vst.msk [vmem:[%s548_s1 + $0x8] ss:$16 sm:$0x3] %vm3_vm0, %v94_v10  }
  0x86   :  { %217 = vst.msk [vmem:[%s548_s1 + $0x8] ss:$16 sm:$0xc] %vm3_vm0, %v94_v10  }
  0x87   :  { %218 = vst.msk [vmem:[%s548_s1 + $0x8] ss:$16 sm:$0x30] %vm3_vm0, %v94_v10  }
  0x88   :  { %219 = vst.msk [vmem:[%s548_s1 + $0x8] ss:$16 sm:$0xc0] %vm3_vm0, %v94_v10  }
  0x89   :  { %212 = vst.msk [vmem:[%s548_s1 + $0x7] ss:$16 sm:$0x3] %vm3_vm0, %v82_v11  }
  0x8a   :  { %213 = vst.msk [vmem:[%s548_s1 + $0x7] ss:$16 sm:$0xc] %vm3_vm0, %v82_v11  }
  0x8b   :  { %214 = vst.msk [vmem:[%s548_s1 + $0x7] ss:$16 sm:$0x30] %vm3_vm0, %v82_v11  }
  0x8c   :  { %215 = vst.msk [vmem:[%s548_s1 + $0x7] ss:$16 sm:$0xc0] %vm3_vm0, %v82_v11   ;;  %v130_v12 = vpop.permute.xlu1 %129   ;;  %v118_v13 = vpop.permute.xlu0 %117  }
  0x8d   :  { %232 = vst.msk [vmem:[%s548_s1 + $0xc] ss:$16 sm:$0x3] %vm3_vm0, %v142_v6  }
  0x8e   :  { %233 = vst.msk [vmem:[%s548_s1 + $0xc] ss:$16 sm:$0xc] %vm3_vm0, %v142_v6  }
  0x8f   :  { %234 = vst.msk [vmem:[%s548_s1 + $0xc] ss:$16 sm:$0x30] %vm3_vm0, %v142_v6  }
  0x90   :  { %235 = vst.msk [vmem:[%s548_s1 + $0xc] ss:$16 sm:$0xc0] %vm3_vm0, %v142_v6  }
  0x91   :  { %228 = vst.msk [vmem:[%s548_s1 + $0xb] ss:$16 sm:$0x3] %vm3_vm0, %v130_v12  }
  0x92   :  { %229 = vst.msk [vmem:[%s548_s1 + $0xb] ss:$16 sm:$0xc] %vm3_vm0, %v130_v12  }
  0x93   :  { %230 = vst.msk [vmem:[%s548_s1 + $0xb] ss:$16 sm:$0x30] %vm3_vm0, %v130_v12  }
  0x94   :  { %231 = vst.msk [vmem:[%s548_s1 + $0xb] ss:$16 sm:$0xc0] %vm3_vm0, %v130_v12   ;;  %v166_v14 = vpop.permute.xlu1 %165   ;;  %v154_v15 = vpop.permute.xlu0 %153  }
  0x95   :  { %224 = vst.msk [vmem:[%s548_s1 + $0xa] ss:$16 sm:$0x3] %vm3_vm0, %v118_v13  }
  0x96   :  { %225 = vst.msk [vmem:[%s548_s1 + $0xa] ss:$16 sm:$0xc] %vm3_vm0, %v118_v13  }
  0x97   :  { %226 = vst.msk [vmem:[%s548_s1 + $0xa] ss:$16 sm:$0x30] %vm3_vm0, %v118_v13  }
  0x98   :  { %227 = vst.msk [vmem:[%s548_s1 + $0xa] ss:$16 sm:$0xc0] %vm3_vm0, %v118_v13  }
  0x99   :  { %244 = vst.msk [vmem:[%s548_s1 + $0xf] ss:$16 sm:$0x3] %vm3_vm0, %v178_v9  }
  0x9a   :  { %245 = vst.msk [vmem:[%s548_s1 + $0xf] ss:$16 sm:$0xc] %vm3_vm0, %v178_v9  }
  0x9b   :  { %246 = vst.msk [vmem:[%s548_s1 + $0xf] ss:$16 sm:$0x30] %vm3_vm0, %v178_v9  }
  0x9c   :  { %247 = vst.msk [vmem:[%s548_s1 + $0xf] ss:$16 sm:$0xc0] %vm3_vm0, %v178_v9  }
  0x9d   :  { %240 = vst.msk [vmem:[%s548_s1 + $0xe] ss:$16 sm:$0x3] %vm3_vm0, %v166_v14  }
  0x9e   :  { %241 = vst.msk [vmem:[%s548_s1 + $0xe] ss:$16 sm:$0xc] %vm3_vm0, %v166_v14  }
  0x9f   :  { %242 = vst.msk [vmem:[%s548_s1 + $0xe] ss:$16 sm:$0x30] %vm3_vm0, %v166_v14  }
  0xa0   :  { %243 = vst.msk [vmem:[%s548_s1 + $0xe] ss:$16 sm:$0xc0] %vm3_vm0, %v166_v14  }
  0xa1   :  { %236 = vst.msk [vmem:[%s548_s1 + $0xd] ss:$16 sm:$0x3] %vm3_vm0, %v154_v15  }
  0xa2   :  { %237 = vst.msk [vmem:[%s548_s1 + $0xd] ss:$16 sm:$0xc] %vm3_vm0, %v154_v15  }
  0xa3   :  { %238 = vst.msk [vmem:[%s548_s1 + $0xd] ss:$16 sm:$0x30] %vm3_vm0, %v154_v15  }
  0xa4   :  { %239 = vst.msk [vmem:[%s548_s1 + $0xd] ss:$16 sm:$0xc0] %vm3_vm0, %v154_v15  }

// kernel: call.1
= control target key start
LH: loop header
LB: loop body
LE: loop exit
PB: predicated region body
PF: predicated region fallthrough
CT: control target
= control target key end

     0   :  { %v1349_v0 = vmov 0   ;;  %vm526_vm0 = vcmask 785408   ;;  %s1350_s9 = smov 32   ;;  %vm687_vm1 = vcmask 523264   ;;  %vm664_vm2 = vcmask 261120   ;;  %s1351_s26 = smov 64   ;;  %s2149_s0 = inlined_call_operand.vmem [shape: f32[128,1], index: 0, kind: input, shape index: {}]   ;;  %s2150_s2 = inlined_call_operand.vmem [shape: f32[248,32], index: 2, kind: input, shape index: {}]   ;;  %s2151_s1 = inlined_call_operand.vmem [shape: f32[96,96], index: 1, kind: input, shape index: {}]   ;;  %s2152_s3 = inlined_call_operand.vmem [shape: f32[16,4], index: 3, kind: output, shape index: {}]  }
   0x1   :  { %1289 = vset.pattern.permute.xlu2 %v1349_v0  ;;  %1288 = vset.pattern.permute.xlu1 %v1349_v0  ;;  %v27_v1 = vld [vmem:[%s2149_s0 + $0x68] sm:$0xff]  ;;  %v26_v2 = vld [vmem:[%s2149_s0 + $0x60] sm:$0xff]  ;;  %v25_v3 = vld [vmem:[%s2149_s0 + $0x58] sm:$0xff]  ;;  %s1352_s24 = smov 112   ;;  %s1353_s25 = smov 120   ;;  %vm1082_vm3 = vcmask 64512  }
   0x2   :  { %1287 = vset.pattern.permute.xlu0 %v1349_v0  ;;  %166 = vperm.xlu1 %1288, %v27_v1   ;;  %v23_v4 = vld [vmem:[%s2149_s0 + $0x48] sm:$0xff]  ;;  %v29_v5 = vld [vmem:[%s2149_s0 + $0x78] sm:$0xff]  ;;  %v24_v6 = vld [vmem:[%s2149_s0 + $0x50] sm:$0xff]  ;;  %vm1221_vm10 = vcmask 31744  }
   0x3   :  { %161 = vperm.xlu2 %1289, %v26_v2   ;;  %89 = vperm.xlu0 %1287, %v25_v3   ;;  %v28_v7 = vld [vmem:[%s2149_s0 + $0x70] sm:$0xff]  ;;  %v22_v8 = vld [vmem:[%s2149_s0 + $0x40] sm:$0xff]  ;;  %v21_v9 = vld [vmem:[%s2149_s0 + $0x38] sm:$0xff] }
   0x4   :  { %v20_v10 = vld [vmem:[%s2149_s0 + $0x30] sm:$0xff]  ;;  %v19_v11 = vld [vmem:[%s2149_s0 + $0x28] sm:$0xff]  ;;  %v18_v12 = vld [vmem:[%s2149_s0 + $0x20] sm:$0xff] }
   0x5   :  { %v17_v13 = vld [vmem:[%s2149_s0 + $0x18] sm:$0xff]  ;;  %v16_v14 = vld [vmem:[%s2149_s0 + $0x10] sm:$0xff]  ;;  %v15_v15 = vld [vmem:[%s2149_s0 + $0x8] sm:$0xff] }
   0x6   :  { %v14_v16 = vld [vmem:[%s2149_s0] sm:$0xff]  ;;  %v1443_v24 = vld [vmem:[%s2150_s2 + $0x11] ss:$0 sm:$0xff]  ;;  %v1465_v36 = vld [vmem:[%s2150_s2 + $0x10] ss:$0 sm:$0xff] }
   0x7   :  { %v1431_v20 = vld [vmem:[%s2150_s2 + $0x3] ss:$0 sm:$0xff]  ;;  %v1436_v22 = vld [vmem:[%s2150_s2 + $0x4] ss:$0 sm:$0xff]  ;;  %v1448_v26 = vld [vmem:[%s2150_s2 + $0x5] ss:$0 sm:$0xff] }
   0x8   :  { %v1456_v30 = vld [vmem:[%s2150_s2] ss:$0 sm:$0xff]  ;;  %v1470_v37 = vld [vmem:[%s2150_s2 + $0x6] ss:$0 sm:$0xff]  ;;  %v1479_v42 = vld [vmem:[%s2150_s2 + $0x1] ss:$0 sm:$0xff] }
   0x9   :  { %v1489_v46 = vld [vmem:[%s2150_s2 + $0x12] ss:$0 sm:$0xff]  ;;  %v1498_v51 = vld [vmem:[%s2150_s2 + $0x7] ss:$0 sm:$0xff]  ;;  %v1503_v52 = vld [vmem:[%s2150_s2 + $0x2] ss:$0 sm:$0xff] }
   0xa   :  { %79 = vperm.xlu1 %1288, %v23_v4  }
   0xb   :  { %242 = vperm.xlu2 %1289, %v29_v5   ;;  %84 = vperm.xlu0 %1287, %v24_v6  }
  0x12   :  { %156 = vperm.xlu1 %1288, %v25_v3  }
  0x13   :  { %237 = vperm.xlu2 %1289, %v28_v7   ;;  %74 = vperm.xlu0 %1287, %v22_v8  }
  0x1a   :  { %152 = vperm.xlu1 %1288, %v24_v6  }
  0x1b   :  { %232 = vperm.xlu2 %1289, %v27_v1   ;;  %69 = vperm.xlu0 %1287, %v21_v9  }
  0x22   :  { %148 = vperm.xlu1 %1288, %v23_v4  }
  0x23   :  { %228 = vperm.xlu2 %1289, %v26_v2   ;;  %64 = vperm.xlu0 %1287, %v20_v10   ;;  %v1517_v2 = vld [vmem:[%s2150_s2 + $0x8] ss:$0 sm:$0xff] }
  0x2a   :  { %144 = vperm.xlu1 %1288, %v22_v8  }
  0x2b   :  { %224 = vperm.xlu2 %1289, %v25_v3   ;;  %59 = vperm.xlu0 %1287, %v19_v11  }
  0x32   :  { %140 = vperm.xlu1 %1288, %v21_v9  }
  0x33   :  { %220 = vperm.xlu2 %1289, %v24_v6   ;;  %54 = vperm.xlu0 %1287, %v18_v12  }
  0x3a   :  { %136 = vperm.xlu1 %1288, %v20_v10  }
  0x3b   :  { %216 = vperm.xlu2 %1289, %v23_v4   ;;  %49 = vperm.xlu0 %1287, %v17_v13  }
  0x42   :  { %132 = vperm.xlu1 %1288, %v19_v11  }
  0x43   :  { %212 = vperm.xlu2 %1289, %v22_v8   ;;  %44 = vperm.xlu0 %1287, %v16_v14  }
  0x4a   :  { %128 = vperm.xlu1 %1288, %v18_v12  }
  0x4b   :  { %208 = vperm.xlu2 %1289, %v21_v9   ;;  %39 = vperm.xlu0 %1287, %v15_v15  }
  0x52   :  { %124 = vperm.xlu1 %1288, %v17_v13  }
  0x53   :  { %204 = vperm.xlu2 %1289, %v20_v10   ;;  %34 = vperm.xlu0 %1287, %v14_v16  }
  0x5a   :  { %200 = vperm.xlu1 %1288, %v19_v11  }
  0x5b   :  { %196 = vperm.xlu2 %1289, %v18_v12   ;;  %120 = vperm.xlu0 %1287, %v16_v14  }
  0x5d   :  { %v1422_v17 = vpop.permute.xlu2 %161 }
  0x5e   :  { %v310_v43 = vmul.f32 %v1436_v22, %v1422_v17  ;;  %v180_v15 = vmul.f32 %v1479_v42, %v1422_v17 }
  0x65   :  { %v1424_v18 = vpop.permute.xlu2 %242 }
  0x66   :  { %v337_v31 = vmul.f32 %v1448_v26, %v1424_v18  ;;  %v257_v3 = vmul.f32 %v1503_v52, %v1424_v18  ;;  %v417_v16 = vmul.f32 %v1517_v2, %v1424_v18  ;;  %v390_v18 = vmul.f32 %v1498_v51, %v1422_v17 }
  0x6d   :  { %v1426_v19 = vpop.permute.xlu2 %237 }
  0x6e   :  { %v336_v49 = vmul.f32 %v1448_v26, %v1426_v19 }
  0x74   :  { %v167_v21 = vpop.permute.xlu1 %166 }
  0x75   :  { %v1438_v23 = vpop.permute.xlu2 %232  ;;  %v90_v25 = vpop.permute.xlu0 %89  ;;  %v311_v28 = vmul.f32 %v1436_v22, %v167_v21  ;;  %v181_v53 = vmul.f32 %v1479_v42, %v167_v21  ;;  %v391_v4 = vmul.f32 %v1498_v51, %v167_v21 }
  0x76   :  { %v284_v27 = vmul.f32 %v1431_v20, %v90_v25  ;;  %v104_v38 = vmul.f32 %v1456_v30, %v90_v25  ;;  %v364_v48 = vmul.f32 %v1470_v37, %v90_v25  ;;  %v335_v63 = vmul.f32 %v1448_v26, %v1438_v23 }
  0x78   :  { %v297_v29 = vadd.f32 %v1443_v24, %v284_v27  ;;  %v117_v47 = vadd.f32 %v1465_v36, %v104_v38  ;;  %v377_v60 = vadd.f32 %v1489_v46, %v364_v48 }
  0x7a   :  { %v323_v32 = vadd.f32 %v311_v28, %v297_v29  ;;  %v193_v59 = vadd.f32 %v181_v53, %v117_v47  ;;  %v403_v10 = vadd.f32 %v391_v4, %v377_v60 }
  0x7c   :  { %v1460_v33 = vpop.permute.xlu1 %79  ;;  %v349_v34 = vadd.f32 %v337_v31, %v323_v32  ;;  %v269_v12 = vadd.f32 %v257_v3, %v193_v59 }
  0x7d   :  { %v85_v35 = vpop.permute.xlu0 %84  ;;  %v1473_v40 = vpop.permute.xlu2 %228  ;;  %v282_v45 = vmul.f32 %v1431_v20, %v1460_v33  ;;  %v102_v21 = vmul.f32 %v1456_v30, %v1460_v33 }
  0x7e   :  { %v441_v39 = vmul.f32 0.5, %v349_v34  ;;  %v283_v41 = vmul.f32 %v1431_v20, %v85_v35  ;;  %v103_v61 = vmul.f32 %v1456_v30, %v85_v35  ;;  %v363_v6 = vmul.f32 %v1470_v37, %v85_v35 }
  0x7f   :  { %v295_v56 = vadd.f32 %v1443_v24, %v282_v45  ;;  %v429_v35 = vadd.f32 %v417_v16, %v403_v10 }
  0x80   :  { %1305 = vtanh.f32 %v441_v39  ;;  %v296_v44 = vadd.f32 %v1443_v24, %v283_v41  ;;  %v116_v11 = vadd.f32 %v1465_v36, %v103_v61  ;;  %v376_v28 = vadd.f32 %v1489_v46, %v363_v6 }
  0x81   :  { %v256_v39 = vmul.f32 %v1503_v52, %v1426_v19  ;;  %v334_v41 = vmul.f32 %v1448_v26, %v1473_v40 }
  0x82   :  { %v322_v50 = vadd.f32 %v310_v43, %v296_v44  ;;  %v192_v34 = vadd.f32 %v180_v15, %v116_v11  ;;  %v362_v44 = vmul.f32 %v1470_v37, %v1460_v33  ;;  %v416_v33 = vmul.f32 %v1517_v2, %v1426_v19 }
  0x83   :  { %v415_v11 = vmul.f32 %v1517_v2, %v1438_v23 }
  0x84   :  { %v157_v54 = vpop.permute.xlu1 %156  ;;  %v348_v55 = vadd.f32 %v336_v49, %v322_v50  ;;  %v402_v49 = vadd.f32 %v390_v18, %v376_v28  ;;  %v115_v50 = vadd.f32 %v1465_v36, %v102_v21 }
  0x85   :  { %v309_v57 = vmul.f32 %v1436_v22, %v157_v54  ;;  %v1508_v58 = vpop.permute.xlu0 %74  ;;  %v1523_v7 = vpop.permute.xlu2 %224  ;;  %v179_v45 = vmul.f32 %v1479_v42, %v157_v54 }
  0x86   :  { %v1306_v62 = vpop.eup %1305  ;;  %v440_v0 = vmul.f32 0.5, %v348_v55  ;;  %v281_v9 = vmul.f32 %v1431_v20, %v1508_v58  ;;  %v389_v55 = vmul.f32 %v1498_v51, %v157_v54  ;;  %v101_v4 = vmul.f32 %v1456_v30, %v1508_v58 }
  0x87   :  { %v321_v1 = vadd.f32 %v309_v57, %v295_v56  ;;  %v465_v5 = vadd.f32 1.0, %v1306_v62  ;;  %v268_v57 = vadd.f32 %v256_v39, %v192_v34  ;;  %v428_v10 = vadd.f32 %v416_v33, %v402_v49 }
  0x88   :  { %1307 = vtanh.f32 %v440_v0  ;;  %v294_v29 = vadd.f32 %v1443_v24, %v281_v9  ;;  %v191_v0 = vadd.f32 %v179_v45, %v115_v50  ;;  %v114_v28 = vadd.f32 %v1465_v36, %v101_v4 }
  0x89   :  { %v347_v8 = vadd.f32 %v335_v63, %v321_v1  ;;  %v477_v13 = vmul.f32 0.5, %v465_v5  ;;  %v375_v63 = vadd.f32 %v1489_v46, %v362_v44 }
  0x8b   :  { %v439_v14 = vmul.f32 0.5, %v347_v8  ;;  %v489_v27 = vmul.f32 %v477_v13, %v269_v12  ;;  %v255_v8 = vmul.f32 %v1503_v52, %v1438_v23  ;;  %v401_v9 = vadd.f32 %v389_v55, %v375_v63 }
  0x8c   :  { %v153_v25 = vpop.permute.xlu1 %152  ;;  %v333_v12 = vmul.f32 %v1448_v26, %v1523_v7  ;;  %v361_v13 = vmul.f32 %v1470_v37, %v1508_v58  ;;  %v414_v55 = vmul.f32 %v1517_v2, %v1473_v40 }
  0x8d   :  { %1309 = vtanh.f32 %v439_v14  ;;  %v308_v31 = vmul.f32 %v1436_v22, %v153_v25  ;;  %v1537_v32 = vpop.permute.xlu0 %69  ;;  %v501_v47 = vadd.f32 %v489_v27, %v429_v35  ;;  %v1556_v61 = vpop.permute.xlu2 %220  ;;  %v267_v15 = vadd.f32 %v255_v8, %v191_v0 }
  0x8e   :  { %v1308_v38 = vpop.eup %1307  ;;  %v280_v17 = vmul.f32 %v1431_v20, %v1537_v32  ;;  %v178_v16 = vmul.f32 %v1479_v42, %v153_v25  ;;  %v388_v23 = vmul.f32 %v1498_v51, %v153_v25  ;;  %v427_v35 = vadd.f32 %v415_v11, %v401_v9 }
  0x8f   :  { %v320_v43 = vadd.f32 %v308_v31, %v294_v29  ;;  %v464_v48 = vadd.f32 1.0, %v1308_v38  ;;  %v1552_v56 = vmax.f32 %v501_v47, 0.0  ;;  %v374_v39 = vadd.f32 %v1489_v46, %v361_v13 }
  0x90   :  { %v293_v5 = vadd.f32 %v1443_v24, %v280_v17  ;;  %v100_v47 = vmul.f32 %v1456_v30, %v1537_v32 }
  0x91   :  { %v346_v53 = vadd.f32 %v334_v41, %v320_v43  ;;  %v476_v59 = vmul.f32 0.5, %v464_v48  ;;  %567 = vmatpush.msra.mxu0 %v1552_v56  ;;  %1262 = vmatpush.msra.mxu3 %v1552_v56  ;;  %v190_v41 = vadd.f32 %v178_v16, %v114_v28  ;;  %v400_v17 = vadd.f32 %v388_v23, %v374_v39 }
  0x92   :  { %v413_v28 = vmul.f32 %v1517_v2, %v1523_v7 }
  0x93   :  { %v1310_v60 = vpop.eup %1309  ;;  %v438_v62 = vmul.f32 0.5, %v346_v53  ;;  %v488_v54 = vmul.f32 %v476_v59, %v268_v57  ;;  %v254_v53 = vmul.f32 %v1503_v52, %v1473_v40  ;;  %v332_v57 = vmul.f32 %v1448_v26, %v1556_v61 }
  0x94   :  { %v149_v1 = vpop.permute.xlu1 %148  ;;  %v463_v3 = vadd.f32 1.0, %v1310_v60  ;;  %v360_v59 = vmul.f32 %v1470_v37, %v1537_v32  ;;  %v426_v32 = vadd.f32 %v414_v55, %v400_v17 }
  0x95   :  { %1311 = vtanh.f32 %v438_v62  ;;  %v307_v19 = vmul.f32 %v1436_v22, %v149_v1  ;;  %v1565_v6 = vpop.permute.xlu0 %64  ;;  %v500_v21 = vadd.f32 %v488_v54, %v428_v10  ;;  %v1587_v25 = vpop.permute.xlu2 %216  ;;  %v266_v33 = vadd.f32 %v254_v53, %v190_v41 }
  0x96   :  { %v475_v27 = vmul.f32 0.5, %v463_v3  ;;  %v279_v31 = vmul.f32 %v1431_v20, %v1565_v6  ;;  %v177_v62 = vmul.f32 %v1479_v42, %v149_v1  ;;  %v113_v54 = vadd.f32 %v1465_v36, %v100_v47 }
  0x97   :  { %v319_v14 = vadd.f32 %v307_v19, %v293_v5  ;;  %v1580_v34 = vmax.f32 %v500_v21, 0.0  ;;  %v387_v40 = vmul.f32 %v1498_v51, %v149_v1  ;;  %v373_v9 = vadd.f32 %v1489_v46, %v360_v59 }
  0x98   :  { %v487_v38 = vmul.f32 %v475_v27, %v267_v15  ;;  %v292_v48 = vadd.f32 %v1443_v24, %v279_v31  ;;  %v189_v10 = vadd.f32 %v177_v62, %v113_v54  ;;  %v253_v21 = vmul.f32 %v1503_v52, %v1523_v7 }
  0x99   :  { %v345_v29 = vadd.f32 %v333_v12, %v319_v14  ;;  %568 = vmatpush.msra.mxu0 %v1580_v34  ;;  %1263 = vmatpush.msra.mxu3 %v1580_v34  ;;  %v99_v14 = vmul.f32 %v1456_v30, %v1565_v6  ;;  %v399_v27 = vadd.f32 %v387_v40, %v373_v9 }
  0x9a   :  { %v499_v44 = vadd.f32 %v487_v38, %v427_v35  ;;  %v359_v31 = vmul.f32 %v1470_v37, %v1565_v6  ;;  %v265_v38 = vadd.f32 %v253_v21, %v189_v10 }
  0x9b   :  { %v1312_v18 = vpop.eup %1311  ;;  %v437_v58 = vmul.f32 0.5, %v345_v29  ;;  %v331_v29 = vmul.f32 %v1448_v26, %v1587_v25  ;;  %v112_v41 = vadd.f32 %v1465_v36, %v99_v14  ;;  %v425_v6 = vadd.f32 %v413_v28, %v399_v27 }
  0x9c   :  { %v145_v43 = vpop.permute.xlu1 %144  ;;  %v462_v45 = vadd.f32 1.0, %v1312_v18  ;;  %v1602_v63 = vmax.f32 %v499_v44, 0.0  ;;  %v372_v53 = vadd.f32 %v1489_v46, %v359_v31 }
  0x9d   :  { %1313 = vtanh.f32 %v437_v58  ;;  %v306_v49 = vmul.f32 %v1436_v22, %v145_v43  ;;  %v1591_v50 = vpop.permute.xlu0 %59  ;;  %v1625_v23 = vpop.permute.xlu2 %212  ;;  %v176_v18 = vmul.f32 %v1479_v42, %v145_v43 }
  0x9e   :  { %v474_v0 = vmul.f32 0.5, %v462_v45  ;;  %v278_v4 = vmul.f32 %v1431_v20, %v1591_v50  ;;  %569 = vmatpush.msra.mxu0 %v1602_v63  ;;  %1264 = vmatpush.msra.mxu3 %v1602_v63  ;;  %v386_v45 = vmul.f32 %v1498_v51, %v145_v43  ;;  %v358_v40 = vmul.f32 %v1470_v37, %v1591_v50 }
  0x9f   :  { %v318_v60 = vadd.f32 %v306_v49, %v292_v48  ;;  %v188_v17 = vadd.f32 %v176_v18, %v112_v41  ;;  %v251_v41 = vmul.f32 %v1503_v52, %v1587_v25 }
  0xa0   :  { %v486_v5 = vmul.f32 %v474_v0, %v266_v33  ;;  %v291_v1 = vadd.f32 %v1443_v24, %v278_v4  ;;  %v252_v0 = vmul.f32 %v1503_v52, %v1556_v61  ;;  %v398_v54 = vadd.f32 %v386_v45, %v372_v53 }
  0xa1   :  { %v344_v3 = vadd.f32 %v332_v57, %v318_v60  ;;  %v98_v60 = vmul.f32 %v1456_v30, %v1591_v50  ;;  %v330_v4 = vmul.f32 %v1448_v26, %v1625_v23  ;;  %v371_v27 = vadd.f32 %v1489_v46, %v358_v40 }
  0xa2   :  { %v498_v12 = vadd.f32 %v486_v5, %v426_v32  ;;  %v264_v5 = vadd.f32 %v252_v0, %v188_v17  ;;  %v250_v40 = vmul.f32 %v1503_v52, %v1625_v23 }
  0xa3   :  { %v1314_v19 = vpop.eup %1313  ;;  %v436_v8 = vmul.f32 0.5, %v344_v3  ;;  %v412_v3 = vmul.f32 %v1517_v2, %v1556_v61  ;;  %v111_v10 = vadd.f32 %v1465_v36, %v98_v60 }
  0xa4   :  { %v141_v11 = vpop.permute.xlu1 %140  ;;  %v461_v13 = vadd.f32 1.0, %v1314_v19  ;;  %v1628_v58 = vmax.f32 %v498_v12, 0.0 }
  0xa5   :  { %1315 = vtanh.f32 %v436_v8  ;;  %v305_v15 = vmul.f32 %v1436_v22, %v141_v11  ;;  %v1615_v16 = vpop.permute.xlu0 %54  ;;  %v175_v19 = vmul.f32 %v1479_v42, %v141_v11  ;;  %v1655_v12 = vpop.permute.xlu2 %208  ;;  %v385_v14 = vmul.f32 %v1498_v51, %v141_v11 }
  0xa6   :  { %v473_v39 = vmul.f32 0.5, %v461_v13  ;;  %v277_v7 = vmul.f32 %v1431_v20, %v1615_v16  ;;  %570 = vmatpush.msra.mxu0 %v1628_v58  ;;  %1265 = vmatpush.msra.mxu3 %v1628_v58  ;;  %v424_v50 = vadd.f32 %v412_v3, %v398_v54  ;;  %v357_v45 = vmul.f32 %v1470_v37, %v1615_v16 }
  0xa7   :  { %v317_v35 = vadd.f32 %v305_v15, %v291_v1  ;;  %v187_v28 = vadd.f32 %v175_v19, %v111_v10 }
  0xa8   :  { %v485_v47 = vmul.f32 %v473_v39, %v265_v38  ;;  %v290_v43 = vadd.f32 %v1443_v24, %v277_v7  ;;  %v97_v38 = vmul.f32 %v1456_v30, %v1615_v16  ;;  %v329_v7 = vmul.f32 %v1448_v26, %v1655_v12 }
  0xa9   :  { %v343_v44 = vadd.f32 %v331_v29, %v317_v35 }
  0xaa   :  { %v497_v57 = vadd.f32 %v485_v47, %v425_v6 }
  0xab   :  { %v1316_v48 = vpop.eup %1315  ;;  %v435_v49 = vmul.f32 0.5, %v343_v44  ;;  %v397_v44 = vadd.f32 %v385_v14, %v371_v27  ;;  %v410_v14 = vmul.f32 %v1517_v2, %v1625_v23 }
  0xac   :  { %v137_v55 = vpop.permute.xlu1 %136  ;;  %v460_v59 = vadd.f32 1.0, %v1316_v48  ;;  %v1652_v8 = vmax.f32 %v497_v57, 0.0  ;;  %v411_v48 = vmul.f32 %v1517_v2, %v1587_v25  ;;  %v110_v57 = vadd.f32 %v1465_v36, %v97_v38 }
  0xad   :  { %1317 = vtanh.f32 %v435_v49  ;;  %v304_v33 = vmul.f32 %v1436_v22, %v137_v55  ;;  %v1641_v62 = vpop.permute.xlu0 %49  ;;  %v174_v6 = vmul.f32 %v1479_v42, %v137_v55  ;;  %v263_v49 = vadd.f32 %v251_v41, %v187_v28  ;;  %v1684_v54 = vpop.permute.xlu2 %204 }
  0xae   :  { %v472_v9 = vmul.f32 0.5, %v460_v59  ;;  %v276_v61 = vmul.f32 %v1431_v20, %v1641_v62  ;;  %571 = vmatpush.msra.mxu0 %v1652_v8  ;;  %1266 = vmatpush.msra.mxu3 %v1652_v8  ;;  %v384_v59 = vmul.f32 %v1498_v51, %v137_v55  ;;  %v423_v16 = vadd.f32 %v411_v48, %v397_v44 }
  0xaf   :  { %v316_v32 = vadd.f32 %v304_v33, %v290_v43  ;;  %v370_v25 = vadd.f32 %v1489_v46, %v357_v45  ;;  %v186_v3 = vadd.f32 %v174_v6, %v110_v57  ;;  %v96_v55 = vmul.f32 %v1456_v30, %v1641_v62 }
  0xb0   :  { %v484_v1 = vmul.f32 %v472_v9, %v264_v5  ;;  %v289_v11 = vadd.f32 %v1443_v24, %v276_v61 }
  0xb1   :  { %v342_v13 = vadd.f32 %v330_v4, %v316_v32  ;;  %v396_v9 = vadd.f32 %v384_v59, %v370_v25 }
  0xb2   :  { %v496_v31 = vadd.f32 %v484_v1, %v424_v50  ;;  %v328_v50 = vmul.f32 %v1448_v26, %v1684_v54  ;;  %v356_v1 = vmul.f32 %v1470_v37, %v1641_v62 }
  0xb3   :  { %v1318_v15 = vpop.eup %1317  ;;  %v434_v21 = vmul.f32 0.5, %v342_v13 }
  0xb4   :  { %v133_v29 = vpop.permute.xlu1 %132  ;;  %v459_v35 = vadd.f32 1.0, %v1318_v15  ;;  %v1676_v53 = vmax.f32 %v496_v31, 0.0  ;;  %v369_v62 = vadd.f32 %v1489_v46, %v356_v1  ;;  %v408_v1 = vmul.f32 %v1517_v2, %v1684_v54 }
  0xb5   :  { %1319 = vtanh.f32 %v434_v21  ;;  %v303_v18 = vmul.f32 %v1436_v22, %v133_v29  ;;  %v45_v39 = vpop.permute.xlu0 %44  ;;  %v262_v21 = vadd.f32 %v250_v40, %v186_v3  ;;  %v173_v27 = vmul.f32 %v1479_v42, %v133_v29 }
  0xb6   :  { %v471_v17 = vmul.f32 0.5, %v459_v35  ;;  %v275_v43 = vmul.f32 %v1431_v20, %v45_v39  ;;  %572 = vmatpush.msra.mxu0 %v1676_v53  ;;  %1267 = vmatpush.msra.mxu3 %v1676_v53  ;;  %v109_v35 = vadd.f32 %v1465_v36, %v96_v55  ;;  %v383_v23 = vmul.f32 %v1498_v51, %v133_v29 }
  0xb7   :  { %v315_v47 = vadd.f32 %v303_v18, %v289_v11  ;;  %v422_v11 = vadd.f32 %v410_v14, %v396_v9  ;;  %v95_v6 = vmul.f32 %v1456_v30, %v45_v39  ;;  %v355_v57 = vmul.f32 %v1470_v37, %v45_v39 }
  0xb8   :  { %v483_v33 = vmul.f32 %v471_v17, %v263_v49  ;;  %v288_v10 = vadd.f32 %v1443_v24, %v275_v43  ;;  %v185_v44 = vadd.f32 %v173_v27, %v109_v35  ;;  %v249_v49 = vmul.f32 %v1503_v52, %v1655_v12 }
  0xb9   :  { %v341_v60 = vadd.f32 %v329_v7, %v315_v47  ;;  %v395_v17 = vadd.f32 %v383_v23, %v369_v62  ;;  %v409_v43 = vmul.f32 %v1517_v2, %v1655_v12  ;;  %v108_v25 = vadd.f32 %v1465_v36, %v95_v6 }
  0xba   :  { %v495_v5 = vadd.f32 %v483_v33, %v423_v16  ;;  %v261_v16 = vadd.f32 %v249_v49, %v185_v44  ;;  %v368_v12 = vadd.f32 %v1489_v46, %v355_v57 }
  0xbb   :  { %v1320_v0 = vpop.eup %1319  ;;  %v433_v4 = vmul.f32 0.5, %v341_v60 }
  0xbc   :  { %v129_v32 = vpop.permute.xlu1 %128  ;;  %v458_v19 = vadd.f32 1.0, %v1320_v0  ;;  %v1700_v15 = vmax.f32 %v495_v5, 0.0 }
  0xbd   :  { %1321 = vtanh.f32 %v433_v4  ;;  %v302_v13 = vmul.f32 %v1436_v22, %v129_v32  ;;  %v1692_v61 = vpop.permute.xlu0 %39  ;;  %v172_v59 = vmul.f32 %v1479_v42, %v129_v32  ;;  %v382_v3 = vmul.f32 %v1498_v51, %v129_v32 }
  0xbe   :  { %v470_v31 = vmul.f32 0.5, %v458_v19  ;;  %573 = vmatpush.msra.mxu0 %v1700_v15  ;;  %1268 = vmatpush.msra.mxu3 %v1700_v15  ;;  %v274_v33 = vmul.f32 %v1431_v20, %v1692_v61  ;;  %v421_v4 = vadd.f32 %v409_v43, %v395_v17  ;;  %v248_v32 = vmul.f32 %v1503_v52, %v1684_v54 }
  0xbf   :  { %v314_v28 = vadd.f32 %v302_v13, %v288_v10  ;;  %v184_v55 = vadd.f32 %v172_v59, %v108_v25  ;;  %v394_v13 = vadd.f32 %v382_v3, %v368_v12  ;;  %v354_v17 = vmul.f32 %v1470_v37, %v1692_v61 }
  0xc0   :  { %v482_v18 = vmul.f32 %v470_v31, %v262_v21  ;;  %v287_v9 = vadd.f32 %v1443_v24, %v274_v33  ;;  %v197_v21 = vpop.permute.xlu2 %196 }
  0xc1   :  { %v340_v38 = vadd.f32 %v328_v50, %v314_v28  ;;  %v326_v54 = vmul.f32 %v1448_v26, %v197_v21  ;;  %v420_v62 = vadd.f32 %v408_v1, %v394_v13  ;;  %v367_v25 = vadd.f32 %v1489_v46, %v354_v17  ;;  %v682_v17 = vld [vmem:[%s2150_s2 + $0x48] sm:$0xff] }
  0xc2   :  { %v494_v45 = vadd.f32 %v482_v18, %v422_v11 }
  0xc3   :  { %v1322_v41 = vpop.eup %1321  ;;  %v432_v7 = vmul.f32 0.5, %v340_v38 }
  0xc4   :  { %v1709_v47 = vpop.permute.xlu1 %124  ;;  %v457_v48 = vadd.f32 1.0, %v1322_v41  ;;  %v1715_v60 = vmax.f32 %v494_v45, 0.0 }
  0xc5   :  { %1323 = vtanh.f32 %v432_v7  ;;  %v35_v29 = vpop.permute.xlu0 %34  ;;  %v301_v39 = vmul.f32 %v1436_v22, %v1709_v47 }
  0xc6   :  { %v469_v0 = vmul.f32 0.5, %v457_v48  ;;  %574 = vmatpush.msra.mxu0 %v1715_v60  ;;  %1269 = vmatpush.msra.mxu3 %v1715_v60  ;;  %v273_v5 = vmul.f32 %v1431_v20, %v35_v29  ;;  %v260_v20 = vadd.f32 %v248_v32, %v184_v55  ;;  %v93_v49 = vmul.f32 %v1456_v30, %v35_v29 }
  0xc7   :  { %v313_v27 = vadd.f32 %v301_v39, %v287_v9  ;;  %v353_v57 = vmul.f32 %v1470_v37, %v35_v29  ;;  %v246_v55 = vmul.f32 %v1503_v52, %v197_v21 }
  0xc8   :  { %v481_v40 = vmul.f32 %v469_v0, %v261_v16  ;;  %v286_v23 = vadd.f32 %v1443_v24, %v273_v5  ;;  %v94_v24 = vmul.f32 %v1456_v30, %v1692_v61  ;;  %v381_v30 = vmul.f32 %v1498_v51, %v1709_v47 }
  0xc9   :  { %v106_v33 = vadd.f32 %v1465_v36, %v93_v49  ;;  %v683_v49 = vld [vmem:[%s2150_s2 + $0x50] sm:$0xff] }
  0xca   :  { %v493_v10 = vadd.f32 %v481_v40, %v421_v4  ;;  %v107_v43 = vadd.f32 %v1465_v36, %v94_v24  ;;  %v393_v40 = vadd.f32 %v381_v30, %v367_v25  ;;  %v678_v25 = vld [vmem:[%s2150_s2 + $0x28] sm:$0xff] }
  0xcb   :  { %v1324_v19 = vpop.eup %1323 }
  0xcc   :  { %v201_v14 = vpop.permute.xlu1 %200  ;;  %v456_v50 = vadd.f32 1.0, %v1324_v19  ;;  %v1735_v35 = vmax.f32 %v493_v10, 0.0 }
  0xcd   :  { %v327_v28 = vmul.f32 %v1448_v26, %v201_v14  ;;  %v121_v31 = vpop.permute.xlu0 %120  ;;  %v171_v26 = vmul.f32 %v1479_v42, %v1709_v47  ;;  %v247_v16 = vmul.f32 %v1503_v52, %v201_v14  ;;  %v407_v39 = vmul.f32 %v1517_v2, %v201_v14  ;;  %v514_v52 = vld [vmem:[%s2151_s1] sm:$0xff] }
  0xce   :  { %v300_v38 = vmul.f32 %v1436_v22, %v121_v31  ;;  %v468_v11 = vmul.f32 0.5, %v456_v50  ;;  %575 = vmatpush.msra.mxu0 %v1735_v35  ;;  %1270 = vmatpush.msra.mxu3 %v1735_v35  ;;  %v170_v59 = vmul.f32 %v1479_v42, %v121_v31  ;;  %v380_v0 = vmul.f32 %v1498_v51, %v121_v31  ;;  %v517_v31 = vld [vmem:[%s2151_s1 + $0x18] sm:$0xff] }
  0xcf   :  { %v339_v18 = vadd.f32 %v327_v28, %v313_v27  ;;  %v183_v3 = vadd.f32 %v171_v26, %v107_v43  ;;  %v366_v42 = vadd.f32 %v1489_v46, %v353_v57  ;;  %v419_v36 = vadd.f32 %v407_v39, %v393_v40  ;;  %v523_v28 = vld [vmem:[%s2151_s1 + $0x48] sm:$0xff] }
  0xd0   :  { %v312_v41 = vadd.f32 %v300_v38, %v286_v23  ;;  %v480_v44 = vmul.f32 %v468_v11, %v260_v20  ;;  %v182_v29 = vadd.f32 %v170_v59, %v106_v33  ;;  %v406_v51 = vmul.f32 %v1517_v2, %v197_v21  ;;  %v515_v2 = vld [vmem:[%s2151_s1 + $0x8] sm:$0xff]  ;;  %v516_v21 = vld [vmem:[%s2151_s1 + $0x10] sm:$0xff]  ;;  %v518_v23 = vld [vmem:[%s2151_s1 + $0x20] sm:$0xff] }
  0xd1   :  { %v431_v7 = vmul.f32 0.5, %v339_v18  ;;  %v259_v12 = vadd.f32 %v247_v16, %v183_v3  ;;  %v392_v5 = vadd.f32 %v380_v0, %v366_v42  ;;  %v524_v20 = vld [vmem:[%s2151_s1 + $0x50] sm:$0xff]  ;;  %v525_v38 = vld [vmem:[%s2151_s1 + $0x58] sm:$0xff]  ;;  %v519_v11 = vld [vmem:[%s2151_s1 + $0x28] sm:$0xff] }
  0xd2   :  { %v338_v45 = vadd.f32 %v326_v54, %v312_v41  ;;  %v492_v6 = vadd.f32 %v480_v44, %v420_v62  ;;  %v258_v10 = vadd.f32 %v246_v55, %v182_v29  ;;  %v520_v18 = vld [vmem:[%s2151_s1 + $0x30] sm:$0xff]  ;;  %v521_v54 = vld [vmem:[%s2151_s1 + $0x38] sm:$0xff]  ;;  %v522_v41 = vld [vmem:[%s2151_s1 + $0x40] sm:$0xff] }
  0xd3   :  { %1325 = vtanh.f32 %v431_v7  ;;  %v418_v14 = vadd.f32 %v406_v51, %v392_v5  ;;  %v680_v33 = vld [vmem:[%s2150_s2 + $0x38] sm:$0xff]  ;;  %v679_v0 = vld [vmem:[%s2150_s2 + $0x30] sm:$0xff]  ;;  %v677_v3 = vld [vmem:[%s2150_s2 + $0x20] sm:$0xff] }
  0xd4   :  { %v430_v48 = vmul.f32 0.5, %v338_v45  ;;  %v1744_v22 = vmax.f32 %v492_v6, 0.0 }
  0xd6   :  { %1327 = vtanh.f32 %v430_v48  ;;  %576 = vmatpush.msra.mxu0 %v1744_v22  ;;  %1271 = vmatpush.msra.mxu3 %v1744_v22  ;;  %v684_v48 = vld [vmem:[%s2150_s2 + $0x58] sm:$0xff] }
  0xd7   :  { %732 = vmatpush.msra.mxu1 %v684_v48 }
  0xd9   :  { %v1326_v61 = vpop.eup %1325  ;;  %733 = vmatpush.msra.mxu1 %v683_v49 }
  0xda   :  { %v455_v37 = vadd.f32 1.0, %v1326_v61  ;;  %v681_v61 = vld [vmem:[%s2150_s2 + $0x40] sm:$0xff] }
  0xdb   :  { %734 = vmatpush.msra.mxu1 %v682_v17 }
  0xdc   :  { %v1328_v4 = vpop.eup %1327  ;;  %v467_v47 = vmul.f32 0.5, %v455_v37 }
  0xdd   :  { %v454_v19 = vadd.f32 1.0, %v1328_v4  ;;  %735 = vmatpush.msra.mxu1 %v681_v61 }
  0xde   :  { %v479_v9 = vmul.f32 %v467_v47, %v259_v12 }
  0xdf   :  { %v466_v32 = vmul.f32 0.5, %v454_v19  ;;  %736 = vmatpush.msra.mxu1 %v680_v33 }
  0xe0   :  { %v491_v13 = vadd.f32 %v479_v9, %v419_v36 }
  0xe1   :  { %v478_v50 = vmul.f32 %v466_v32, %v258_v10  ;;  %737 = vmatpush.msra.mxu1 %v679_v0 }
  0xe2   :  { %v1766_v1 = vmax.f32 %v491_v13, 0.0 }
  0xe3   :  { %v490_v46 = vadd.f32 %v478_v50, %v418_v14  ;;  %738 = vmatpush.msra.mxu1 %v678_v25 }
  0xe4   :  { %577 = vmatpush.msra.mxu0 %v1766_v1  ;;  %1272 = vmatpush.msra.mxu3 %v1766_v1 }
  0xe5   :  { %v1770_v27 = vmax.f32 %v490_v46, 0.0  ;;  %739 = vmatpush.msra.mxu1 %v677_v3 }
  0xe7   :  { %578 = vmatpush.msra.mxu0 %v1770_v27  ;;  %1273 = vmatpush.msra.mxu3 %v1770_v27 }
  0xe8   :  { %1228 = vmatmul.msk.f32.vlgmr.msra.gmra.mxu0 %vm526_vm0, %v514_v52  ;;  %1237 = vmatmul.msk.f32.vlgmr.msra.gmra.mxu3 %vm526_vm0, %v523_v28 }
  0xe9   :  { %1274 = vmatpush.msrb.mxu3 %v684_v48 }
  0xeb   :  { %1275 = vmatpush.msrb.mxu3 %v683_v49 }
  0xed   :  { %1276 = vmatpush.msrb.mxu3 %v682_v17 }
  0xef   :  { %1277 = vmatpush.msrb.mxu3 %v681_v61  ;;  %v872_v61 = vld [vmem:[%s2150_s2 + $0xa8] sm:$0xff] }
  0xf0   :  { %1229 = vmatmul.msk.f32.gmra.mxu0 %vm526_vm0, %v515_v2  ;;  %1238 = vmatmul.msk.f32.gmra.mxu3 %vm526_vm0, %v524_v20 }
  0xf1   :  { %1278 = vmatpush.msrb.mxu3 %v680_v33  ;;  %v871_v33 = vld [vmem:[%s2150_s2 + $0xa0] sm:$0xff] }
  0xf3   :  { %1279 = vmatpush.msrb.mxu3 %v679_v0  ;;  %v870_v0 = vld [vmem:[%s2150_s2 + $0x98] sm:$0xff] }
  0xf5   :  { %1280 = vmatpush.msrb.mxu3 %v678_v25  ;;  %v869_v25 = vld [vmem:[%s2150_s2 + $0x90] sm:$0xff] }
  0xf7   :  { %1281 = vmatpush.msrb.mxu3 %v677_v3  ;;  %v868_v3 = vld [vmem:[%s2150_s2 + $0x88] sm:$0xff] }
  0xf8   :  { %1230 = vmatmul.msk.f32.gmra.mxu0 %vm526_vm0, %v516_v21  ;;  %1239 = vmatmul.msk.f32.gmra.mxu3 %vm526_vm0, %v525_v38 }
 0x100   :  { %1231 = vmatmul.msk.f32.gmra.mxu0 %vm526_vm0, %v517_v31 }
 0x108   :  { %1232 = vmatmul.msk.f32.gmra.mxu0 %vm526_vm0, %v518_v23 }
 0x110   :  { %1233 = vmatmul.msk.f32.gmra.mxu0 %vm526_vm0, %v519_v11 }
 0x118   :  { %1234 = vmatmul.msk.f32.gmra.mxu0 %vm526_vm0, %v520_v18 }
 0x120   :  { %1235 = vmatmul.msk.f32.gmra.mxu0 %vm526_vm0, %v521_v54 }
 0x128   :  { %1236 = vmatmul.msk.f32.gmra.mxu0 %vm526_vm0, %v522_v41 }
 0x165   :  { %v580_v62 = vpop.f32.mrf.mxu0 }
 0x166   :  { %628 = vrot.lane.b32.xlu0 %v580_v62, %s1350_s9 }
 0x16b   :  { %v607_v57 = vpop.f32.mrf.mxu3 }
 0x16d   :  { %v583_v44 = vpop.f32.mrf.mxu0 }
 0x16e   :  { %630 = vrot.lane.b32.xlu1 %v583_v44, %s1350_s9 }
 0x173   :  { %v610_v43 = vpop.f32.mrf.mxu3 }
 0x175   :  { %v586_v7 = vpop.f32.mrf.mxu0 }
 0x176   :  { %632 = vrot.lane.b32.xlu2 %v586_v7, %s1350_s9 }
 0x17b   :  { %v613_v16 = vpop.f32.mrf.mxu3 }
 0x17d   :  { %v589_v45 = vpop.f32.mrf.mxu0 }
 0x17e   :  { %634 = vrot.lane.b32.xlu0 %v589_v45, %s1350_s9 }
 0x185   :  { %v592_v6 = vpop.f32.mrf.mxu0 }
 0x186   :  { %636 = vrot.lane.b32.xlu1 %v592_v6, %s1350_s9 }
 0x18d   :  { %v595_v24 = vpop.f32.mrf.mxu0 }
 0x18e   :  { %638 = vrot.lane.b32.xlu2 %v595_v24, %s1350_s9 }
 0x195   :  { %v598_v26 = vpop.f32.mrf.mxu0 }
 0x196   :  { %640 = vrot.lane.b32.xlu0 %v598_v26, %s1350_s9 }
 0x19d   :  { %v601_v59 = vpop.f32.mrf.mxu0 }
 0x19e   :  { %646 = vrot.lane.b32.xlu0 %v607_v57, %s1350_s9  ;;  %642 = vrot.lane.b32.xlu1 %v601_v59, %s1350_s9 }
 0x1a5   :  { %v604_v30 = vpop.f32.mrf.mxu0 }
 0x1a6   :  { %648 = vrot.lane.b32.xlu1 %v610_v43, %s1350_s9  ;;  %644 = vrot.lane.b32.xlu2 %v604_v30, %s1350_s9  ;;  %v874_v30 = vld [vmem:[%s2150_s2 + $0xb8] sm:$0xff] }
 0x1a7   :  { %905 = vmatpush.msra.mxu2 %v874_v30 }
 0x1ae   :  { %650 = vrot.lane.b32.xlu2 %v613_v16, %s1350_s9  ;;  %v873_v16 = vld [vmem:[%s2150_s2 + $0xb0] sm:$0xff] }
 0x1af   :  { %906 = vmatpush.msra.mxu2 %v873_v16 }
 0x1b1   :  { %907 = vmatpush.msra.mxu2 %v872_v61 }
 0x1b3   :  { %908 = vmatpush.msra.mxu2 %v871_v33 }
 0x1b5   :  { %909 = vmatpush.msra.mxu2 %v870_v0 }
 0x1b7   :  { %910 = vmatpush.msra.mxu2 %v869_v25 }
 0x1b9   :  { %911 = vmatpush.msra.mxu2 %v868_v3 }
 0x1d0   :  { %v633_v4 = vpop.permute.xlu2 %632 }
 0x1d1   :  { %v667_v40 = vsel %vm664_vm2, %v1744_v22, %v633_v4  ;;  %v863_v4 = vld [vmem:[%s2150_s2 + $0x60] sm:$0xff] }
 0x1d8   :  { %v629_v39 = vpop.permute.xlu0 %628 }
 0x1d9   :  { %v665_v37 = vsel %vm664_vm2, %v1770_v27, %v629_v39  ;;  %v867_v39 = vld [vmem:[%s2150_s2 + $0x80] sm:$0xff] }
 0x1da   :  { %1240 = vmatmul.msk.f32.vlgmr.msra.gmra.mxu1 %vm687_vm1, %v665_v37  ;;  %v866_v37 = vld [vmem:[%s2150_s2 + $0x78] sm:$0xff]  ;;  %912 = vmatpush.msra.mxu2 %v867_v39 }
 0x1dc   :  { %913 = vmatpush.msra.mxu2 %v866_v37 }
 0x1e0   :  { %v631_v42 = vpop.permute.xlu1 %630 }
 0x1e1   :  { %v666_v29 = vsel %vm664_vm2, %v1766_v1, %v631_v42  ;;  %v865_v42 = vld [vmem:[%s2150_s2 + $0x70] sm:$0xff] }
 0x1e2   :  { %1241 = vmatmul.msk.f32.gmra.mxu1 %vm687_vm1, %v666_v29  ;;  %v864_v29 = vld [vmem:[%s2150_s2 + $0x68] sm:$0xff]  ;;  %914 = vmatpush.msra.mxu2 %v865_v42 }
 0x1e4   :  { %915 = vmatpush.msra.mxu2 %v864_v29 }
 0x1e6   :  { %916 = vmatpush.msra.mxu2 %v863_v4 }
 0x1e8   :  { %v639_v19 = vpop.permute.xlu2 %638 }
 0x1e9   :  { %v670_v36 = vsel %vm664_vm2, %v1700_v15, %v639_v19 }
 0x1ea   :  { %1242 = vmatmul.msk.f32.gmra.mxu1 %vm687_vm1, %v667_v40 }
 0x1f0   :  { %v635_v12 = vpop.permute.xlu0 %634 }
 0x1f1   :  { %v668_v47 = vsel %vm664_vm2, %v1735_v35, %v635_v12 }
 0x1f2   :  { %1243 = vmatmul.msk.f32.gmra.mxu1 %vm687_vm1, %v668_v47 }
 0x1f8   :  { %v637_v55 = vpop.permute.xlu1 %636 }
 0x1f9   :  { %v669_v5 = vsel %vm664_vm2, %v1715_v60, %v637_v55 }
 0x1fa   :  { %1244 = vmatmul.msk.f32.gmra.mxu1 %vm687_vm1, %v669_v5 }
 0x200   :  { %v645_v60 = vpop.permute.xlu2 %644 }
 0x201   :  { %v673_v15 = vsel %vm664_vm2, %v1628_v58, %v645_v60  ;;  %v1901_v58 = vld [vmem:[%s2150_s2 + $0x18] ss:$0 sm:$0xff] }
 0x202   :  { %1245 = vmatmul.msk.f32.gmra.mxu1 %vm687_vm1, %v670_v36 }
 0x208   :  { %v641_v22 = vpop.permute.xlu0 %640 }
 0x209   :  { %v671_v9 = vsel %vm664_vm2, %v1676_v53, %v641_v22  ;;  %v651_v53 = vpop.permute.xlu2 %650 }
 0x20a   :  { %1246 = vmatmul.msk.f32.gmra.mxu1 %vm687_vm1, %v671_v9 }
 0x210   :  { %v643_v35 = vpop.permute.xlu1 %642  ;;  %v647_v13 = vpop.permute.xlu0 %646 }
 0x211   :  { %v672_v51 = vsel %vm664_vm2, %v1652_v8, %v643_v35  ;;  %v674_v14 = vsel %vm664_vm2, %v1602_v63, %v647_v13  ;;  %v676_v8 = vsel %vm664_vm2, %v1552_v56, %v651_v53 }
 0x212   :  { %1247 = vmatmul.msk.f32.gmra.mxu1 %vm687_vm1, %v672_v51 }
 0x218   :  { %v649_v10 = vpop.permute.xlu1 %648 }
 0x219   :  { %v675_v32 = vsel %vm664_vm2, %v1580_v34, %v649_v10 }
 0x21a   :  { %1248 = vmatmul.msk.f32.gmra.mxu1 %vm687_vm1, %v673_v15  ;;  %1250 = vmatmul.msk.f32.vlgmr.msrb.gmra.mxu3 %vm687_vm1, %v675_v32 }
 0x222   :  { %1249 = vmatmul.msk.f32.gmra.mxu1 %vm687_vm1, %v674_v14  ;;  %1251 = vmatmul.msk.f32.gmra.mxu3 %vm687_vm1, %v676_v8 }
 0x257   :  { %v1894_v34 = vpop.f32.mrf.mxu1 }
 0x258   :  { %v742_v40 = vadd.f32 %v1901_v58, %v1894_v34 }
 0x25a   :  { %v777_v47 = vmax.f32 %v742_v40, 0.0 }
 0x25f   :  { %v1896_v50 = vpop.f32.mrf.mxu1 }
 0x260   :  { %v745_v36 = vadd.f32 %v1901_v58, %v1896_v50 }
 0x262   :  { %v778_v9 = vmax.f32 %v745_v36, 0.0 }
 0x267   :  { %v747_v1 = vpop.f32.mrf.mxu1 }
 0x268   :  { %v1904_v46 = vadd.f32 %v1901_v58, %v747_v1 }
 0x26a   :  { %v779_v63 = vmax.f32 %v1904_v46, 0.0 }
 0x26c   :  { %797 = vrot.lane.b32.xlu0 %v779_v63, %s1350_s9 }
 0x26f   :  { %v750_v56 = vpop.f32.mrf.mxu1 }
 0x270   :  { %v1911_v27 = vadd.f32 %v1901_v58, %v750_v56 }
 0x272   :  { %v780_v52 = vmax.f32 %v1911_v27, 0.0 }
 0x274   :  { %799 = vrot.lane.b32.xlu2 %v780_v52, %s1350_s9 }
 0x277   :  { %v753_v2 = vpop.f32.mrf.mxu1 }
 0x278   :  { %v754_v21 = vadd.f32 %v1901_v58, %v753_v2 }
 0x27a   :  { %v1918_v28 = vmax.f32 %v754_v21, 0.0 }
 0x27c   :  { %823 = vrot.lane.b32.xlu1 %v1918_v28, %s1351_s26 }
 0x27f   :  { %v756_v31 = vpop.f32.mrf.mxu1 }
 0x280   :  { %v757_v20 = vadd.f32 %v1901_v58, %v756_v31 }
 0x282   :  { %v1923_v23 = vmax.f32 %v757_v20, 0.0 }
 0x284   :  { %825 = vrot.lane.b32.xlu0 %v1923_v23, %s1351_s26  ;;  %801 = vrot.lane.b32.xlu1 %v1918_v28, %s1350_s9 }
 0x287   :  { %v759_v38 = vpop.f32.mrf.mxu1 }
 0x288   :  { %v760_v11 = vadd.f32 %v1901_v58, %v759_v38 }
 0x28a   :  { %v1930_v18 = vmax.f32 %v760_v11, 0.0 }
 0x28c   :  { %803 = vrot.lane.b32.xlu0 %v1923_v23, %s1350_s9  ;;  %827 = vrot.lane.b32.xlu2 %v1930_v18, %s1351_s26 }
 0x28f   :  { %v762_v54 = vpop.f32.mrf.mxu1 }
 0x290   :  { %v763_v41 = vadd.f32 %v1901_v58, %v762_v54  ;;  %v1303_v54 = vld [vmem:[%s2150_s2 + $0xc0] ss:$0 sm:$0xff] }
 0x292   :  { %v1937_v62 = vmax.f32 %v763_v41, 0.0 }
 0x294   :  { %829 = vrot.lane.b32.xlu1 %v1937_v62, %s1351_s26  ;;  %805 = vrot.lane.b32.xlu2 %v1930_v18, %s1350_s9 }
 0x297   :  { %v765_v44 = vpop.f32.mrf.mxu1 }
 0x298   :  { %v766_v7 = vadd.f32 %v1901_v58, %v765_v44 }
 0x29a   :  { %v785_v45 = vmax.f32 %v766_v7, 0.0 }
 0x29c   :  { %807 = vrot.lane.b32.xlu1 %v1937_v62, %s1350_s9  ;;  %831 = vrot.lane.b32.xlu0 %v785_v45, %s1351_s26 }
 0x29d   :  { %v771_v6 = vpop.f32.mrf.mxu3 }
 0x29e   :  { %v772_v24 = vadd.f32 %v1901_v58, %v771_v6 }
 0x29f   :  { %v768_v48 = vpop.f32.mrf.mxu1 }
 0x2a0   :  { %v769_v49 = vadd.f32 %v1901_v58, %v768_v48  ;;  %v787_v17 = vmax.f32 %v772_v24, 0.0 }
 0x2a2   :  { %v786_v26 = vmax.f32 %v769_v49, 0.0 }
 0x2a4   :  { %835 = vrot.lane.b32.xlu1 %v787_v17, %s1351_s26  ;;  %833 = vrot.lane.b32.xlu2 %v786_v26, %s1351_s26 }
 0x2a5   :  { %809 = vrot.lane.b32.xlu0 %v785_v45, %s1350_s9  ;;  %v774_v57 = vpop.f32.mrf.mxu3 }
 0x2a6   :  { %v775_v59 = vadd.f32 %v1901_v58, %v774_v57 }
 0x2a8   :  { %v788_v43 = vmax.f32 %v775_v59, 0.0 }
 0x2ac   :  { %811 = vrot.lane.b32.xlu2 %v786_v26, %s1350_s9 }
 0x2ad   :  { %837 = vrot.lane.b32.xlu0 %v788_v43, %s1351_s26 }
 0x2ce   :  { %v800_v22 = vpop.permute.xlu2 %799 }
 0x2cf   :  { %v848_v35 = vsel %vm664_vm2, %v778_v9, %v800_v22 }
 0x2de   :  { %v798_v12 = vpop.permute.xlu0 %797 }
 0x2df   :  { %v847_v55 = vsel %vm664_vm2, %v777_v47, %v798_v12 }
 0x2e6   :  { %v828_v15 = vpop.permute.xlu2 %827 }
 0x2ee   :  { %v824_v5 = vpop.permute.xlu1 %823  ;;  %v806_v50 = vpop.permute.xlu2 %805 }
 0x2ef   :  { %v855_v19 = vsel %vm687_vm1, %v847_v55, %v824_v5  ;;  %v851_v58 = vsel %vm664_vm2, %v1918_v28, %v806_v50 }
 0x2f0   :  { %1252 = vmatmul.msk.f32.vlgmr.msra.gmra.mxu2 %vm526_vm0, %v855_v19 }
 0x2f6   :  { %v826_v51 = vpop.permute.xlu0 %825  ;;  %v802_v10 = vpop.permute.xlu1 %801 }
 0x2f7   :  { %v856_v60 = vsel %vm687_vm1, %v848_v35, %v826_v51  ;;  %v849_v32 = vsel %vm664_vm2, %v779_v63, %v802_v10 }
 0x2f8   :  { %1253 = vmatmul.msk.f32.gmra.mxu2 %vm526_vm0, %v856_v60  ;;  %v857_v53 = vsel %vm687_vm1, %v849_v32, %v828_v15 }
 0x2fe   :  { %v804_v13 = vpop.permute.xlu0 %803  ;;  %v834_v27 = vpop.permute.xlu2 %833 }
 0x2ff   :  { %v850_v14 = vsel %vm664_vm2, %v780_v52, %v804_v13 }
 0x300   :  { %1254 = vmatmul.msk.f32.gmra.mxu2 %vm526_vm0, %v857_v53 }
 0x306   :  { %v830_v8 = vpop.permute.xlu1 %829  ;;  %v812_v20 = vpop.permute.xlu2 %811 }
 0x307   :  { %v858_v34 = vsel %vm687_vm1, %v850_v14, %v830_v8  ;;  %v854_v11 = vsel %vm664_vm2, %v1937_v62, %v812_v20 }
 0x308   :  { %1255 = vmatmul.msk.f32.gmra.mxu2 %vm526_vm0, %v858_v34 }
 0x30e   :  { %v832_v1 = vpop.permute.xlu0 %831  ;;  %v808_v63 = vpop.permute.xlu1 %807 }
 0x30f   :  { %v859_v46 = vsel %vm687_vm1, %v851_v58, %v832_v1  ;;  %v852_v56 = vsel %vm664_vm2, %v1923_v23, %v808_v63 }
 0x310   :  { %1256 = vmatmul.msk.f32.gmra.mxu2 %vm526_vm0, %v859_v46  ;;  %v860_v52 = vsel %vm687_vm1, %v852_v56, %v834_v27 }
 0x316   :  { %v836_v21 = vpop.permute.xlu1 %835 }
 0x317   :  { %v810_v2 = vpop.permute.xlu0 %809 }
 0x318   :  { %1257 = vmatmul.msk.f32.gmra.mxu2 %vm526_vm0, %v860_v52  ;;  %v853_v31 = vsel %vm664_vm2, %v1930_v18, %v810_v2 }
 0x319   :  { %v861_v28 = vsel %vm687_vm1, %v853_v31, %v836_v21 }
 0x31f   :  { %v838_v38 = vpop.permute.xlu0 %837 }
 0x320   :  { %1258 = vmatmul.msk.f32.gmra.mxu2 %vm526_vm0, %v861_v28  ;;  %v862_v23 = vsel %vm687_vm1, %v854_v11, %v838_v38 }
 0x328   :  { %1259 = vmatmul.msk.f32.gmra.mxu2 %vm526_vm0, %v862_v23 }
 0x373   :  { %v918_v41 = vpop.f32.mrf.mxu2 }
 0x374   :  { %v2030_v44 = vadd.f32 %v1303_v54, %v918_v41 }
 0x376   :  { %v942_v18 = vmul.f32 0.5, %v2030_v44  ;;  %1022 = vrot.lane.b32.xlu1 %v2030_v44, %s1352_s24 }
 0x378   :  { %1329 = vtanh.f32 %v942_v18 }
 0x37b   :  { %v921_v7 = vpop.f32.mrf.mxu2 }
 0x37c   :  { %v2035_v62 = vadd.f32 %v1303_v54, %v921_v7 }
 0x37e   :  { %v1330_v45 = vpop.eup %1329  ;;  %v943_v6 = vmul.f32 0.5, %v2035_v62  ;;  %1024 = vrot.lane.b32.xlu0 %v2035_v62, %s1352_s24 }
 0x37f   :  { %v958_v24 = vadd.f32 1.0, %v1330_v45 }
 0x380   :  { %1331 = vtanh.f32 %v943_v6 }
 0x381   :  { %v966_v48 = vmul.f32 0.5, %v958_v24 }
 0x383   :  { %982 = vrot.lane.b32.xlu1 %v966_v48, %s1353_s25  ;;  %v924_v49 = vpop.f32.mrf.mxu2 }
 0x384   :  { %v2041_v17 = vadd.f32 %v1303_v54, %v924_v49 }
 0x386   :  { %v1332_v26 = vpop.eup %1331  ;;  %v944_v57 = vmul.f32 0.5, %v2041_v17  ;;  %1026 = vrot.lane.b32.xlu2 %v2041_v17, %s1352_s24 }
 0x387   :  { %v959_v59 = vadd.f32 1.0, %v1332_v26 }
 0x388   :  { %1333 = vtanh.f32 %v944_v57 }
 0x389   :  { %v967_v43 = vmul.f32 0.5, %v959_v59 }
 0x38b   :  { %984 = vrot.lane.b32.xlu0 %v967_v43, %s1353_s25  ;;  %v927_v30 = vpop.f32.mrf.mxu2 }
 0x38c   :  { %v2047_v16 = vadd.f32 %v1303_v54, %v927_v30 }
 0x38e   :  { %v1334_v61 = vpop.eup %1333  ;;  %v945_v33 = vmul.f32 0.5, %v2047_v16  ;;  %1028 = vrot.lane.b32.xlu1 %v2047_v16, %s1352_s24 }
 0x38f   :  { %v960_v0 = vadd.f32 1.0, %v1334_v61 }
 0x390   :  { %1335 = vtanh.f32 %v945_v33 }
 0x391   :  { %v968_v25 = vmul.f32 0.5, %v960_v0 }
 0x393   :  { %986 = vrot.lane.b32.xlu2 %v968_v25, %s1353_s25  ;;  %v930_v3 = vpop.f32.mrf.mxu2 }
 0x394   :  { %v931_v39 = vadd.f32 %v1303_v54, %v930_v3 }
 0x396   :  { %v1336_v37 = vpop.eup %1335  ;;  %v946_v42 = vmul.f32 0.5, %v931_v39  ;;  %1030 = vrot.lane.b32.xlu1 %v931_v39, %s1352_s24 }
 0x397   :  { %v961_v29 = vadd.f32 1.0, %v1336_v37 }
 0x398   :  { %1337 = vtanh.f32 %v946_v42 }
 0x399   :  { %v969_v12 = vmul.f32 0.5, %v961_v29 }
 0x39b   :  { %v933_v4 = vpop.f32.mrf.mxu2 }
 0x39c   :  { %v2054_v40 = vadd.f32 %v1303_v54, %v933_v4 }
 0x39e   :  { %v1338_v47 = vpop.eup %1337  ;;  %v947_v55 = vmul.f32 0.5, %v2054_v40  ;;  %988 = vrot.lane.b32.xlu1 %v969_v12, %s1353_s25 }
 0x39f   :  { %v962_v5 = vadd.f32 1.0, %v1338_v47 }
 0x3a0   :  { %1339 = vtanh.f32 %v947_v55 }
 0x3a1   :  { %v970_v19 = vmul.f32 0.5, %v962_v5 }
 0x3a3   :  { %990 = vrot.lane.b32.xlu0 %v970_v19, %s1353_s25  ;;  %v936_v36 = vpop.f32.mrf.mxu2 }
 0x3a4   :  { %v937_v22 = vadd.f32 %v1303_v54, %v936_v36 }
 0x3a6   :  { %v1340_v9 = vpop.eup %1339  ;;  %v948_v35 = vmul.f32 0.5, %v937_v22  ;;  %1034 = vrot.lane.b32.xlu2 %v937_v22, %s1352_s24 }
 0x3a7   :  { %v963_v51 = vadd.f32 1.0, %v1340_v9 }
 0x3a8   :  { %1341 = vtanh.f32 %v948_v35 }
 0x3a9   :  { %v971_v32 = vmul.f32 0.5, %v963_v51 }
 0x3ab   :  { %v939_v60 = vpop.f32.mrf.mxu2 }
 0x3ac   :  { %v940_v10 = vadd.f32 %v1303_v54, %v939_v60 }
 0x3ae   :  { %v1342_v15 = vpop.eup %1341  ;;  %v949_v53 = vmul.f32 0.5, %v940_v10  ;;  %992 = vrot.lane.b32.xlu2 %v971_v32, %s1353_s25  ;;  %1036 = vrot.lane.b32.xlu1 %v940_v10, %s1352_s24 }
 0x3af   :  { %v964_v13 = vadd.f32 1.0, %v1342_v15 }
 0x3b0   :  { %1343 = vtanh.f32 %v949_v53 }
 0x3b1   :  { %v972_v14 = vmul.f32 0.5, %v964_v13 }
 0x3b3   :  { %994 = vrot.lane.b32.xlu0 %v972_v14, %s1353_s25 }
 0x3b6   :  { %v1344_v8 = vpop.eup %1343 }
 0x3b7   :  { %v965_v34 = vadd.f32 1.0, %v1344_v8 }
 0x3b9   :  { %v973_v50 = vmul.f32 0.5, %v965_v34 }
 0x3bb   :  { %1032 = vrot.lane.b32.xlu0 %v2054_v40, %s1352_s24  ;;  %996 = vrot.lane.b32.xlu2 %v973_v50, %s1353_s25 }
 0x3e0   :  { %v1027_v46 = vpop.permute.xlu2 %1026 }
 0x3e8   :  { %v1023_v58 = vpop.permute.xlu1 %1022 }
 0x3ed   :  { %v987_v27 = vpop.permute.xlu2 %986 }
 0x3ee   :  { %v1008_v20 = vmul.f32 %v987_v27, %v2041_v17 }
 0x3f0   :  { %v1025_v63 = vpop.permute.xlu0 %1024  ;;  %v1048_v23 = vadd.f32 %v1027_v46, %v1008_v20 }
 0x3f2   :  { %v2071_v6 = vmax.f32 %v1048_v23, 0.0 }
 0x3f4   :  { %v1066_v57 = vmul.f32 %v2071_v6, %v2071_v6 }
 0x3f5   :  { %v983_v1 = vpop.permute.xlu1 %982 }
 0x3f6   :  { %v1006_v31 = vmul.f32 %v983_v1, %v2030_v44 }
 0x3f8   :  { %v1046_v11 = vadd.f32 %v1023_v58, %v1006_v31 }
 0x3fa   :  { %v2068_v7 = vmax.f32 %v1046_v11, 0.0 }
 0x3fc   :  { %v1062_v44 = vmul.f32 %v2068_v7, %v2068_v7 }
 0x3fd   :  { %v985_v52 = vpop.permute.xlu0 %984 }
 0x3fe   :  { %v1007_v24 = vmul.f32 %v985_v52, %v2035_v62  ;;  %v1068_v33 = vadd.f32 %v1066_v57, %v1062_v44 }
 0x400   :  { %v1029_v56 = vpop.permute.xlu1 %1028  ;;  %v1035_v2 = vpop.permute.xlu2 %1034  ;;  %v1047_v59 = vadd.f32 %v1025_v63, %v1007_v24 }
 0x402   :  { %v2089_v37 = vmax.f32 %v1047_v59, 0.0 }
 0x404   :  { %v1063_v9 = vmul.f32 %v2089_v37, %v2089_v37 }
 0x408   :  { %v1031_v21 = vpop.permute.xlu1 %1030  ;;  %v993_v54 = vpop.permute.xlu2 %992 }
 0x409   :  { %v1011_v42 = vmul.f32 %v993_v54, %v2054_v40 }
 0x410   :  { %v989_v41 = vpop.permute.xlu1 %988 }
 0x411   :  { %v1009_v45 = vmul.f32 %v989_v41, %v2047_v16  ;;  %v1064_v16 = vadd.f32 %v2071_v6, %v2068_v7 }
 0x413   :  { %v1049_v17 = vadd.f32 %v1029_v56, %v1009_v45 }
 0x415   :  { %v991_v28 = vpop.permute.xlu0 %990  ;;  %v997_v43 = vpop.permute.xlu2 %996  ;;  %v2084_v0 = vmax.f32 %v1049_v17, 0.0 }
 0x416   :  { %v1010_v38 = vmul.f32 %v991_v28, %v931_v39  ;;  %v1013_v25 = vmul.f32 %v997_v43, %v940_v10 }
 0x417   :  { %v1067_v5 = vmul.f32 %v2084_v0, %v2084_v0  ;;  %v1065_v60 = vadd.f32 %v2084_v0, %v2089_v37 }
 0x418   :  { %v1050_v18 = vadd.f32 %v1031_v21, %v1010_v38 }
 0x419   :  { %v1069_v15 = vadd.f32 %v1067_v5, %v1063_v9 }
 0x41a   :  { %v2074_v48 = vmax.f32 %v1050_v18, 0.0 }
 0x41c   :  { %v1072_v62 = vmul.f32 %v2074_v48, %v2074_v48  ;;  %v1070_v39 = vadd.f32 %v1064_v16, %v2074_v48 }
 0x41e   :  { %v1074_v12 = vadd.f32 %v1072_v62, %v1068_v33  ;;  %v1104_v33 = vld [vmem:[%s2150_s2 + $0xd0] sm:$0xff] }
 0x420   :  { %v1037_v61 = vpop.permute.xlu1 %1036 }
 0x421   :  { %v1053_v29 = vadd.f32 %v1037_v61, %v1013_v25 }
 0x423   :  { %v2100_v40 = vmax.f32 %v1053_v29, 0.0  ;;  %v1106_v29 = vld [vmem:[%s2150_s2 + $0xe0] sm:$0xff] }
 0x425   :  { %v995_v49 = vpop.permute.xlu0 %994  ;;  %v1079_v14 = vmul.f32 %v2100_v40, %v2100_v40 }
 0x426   :  { %v1012_v26 = vmul.f32 %v995_v49, %v937_v22  ;;  %v1103_v49 = vld [vmem:[%s2150_s2 + $0xc8] sm:$0xff] }
 0x428   :  { %v1052_v30 = vadd.f32 %v1035_v2, %v1012_v26 }
 0x42a   :  { %v2086_v3 = vmax.f32 %v1052_v30, 0.0  ;;  %v1105_v30 = vld [vmem:[%s2150_s2 + $0xd8] sm:$0xff] }
 0x42c   :  { %v1076_v4 = vadd.f32 %v1070_v39, %v2086_v3  ;;  %v1078_v47 = vmul.f32 %v2086_v3, %v2086_v3 }
 0x42d   :  { %v1033_v55 = vpop.permute.xlu0 %1032 }
 0x42e   :  { %v1051_v19 = vadd.f32 %v1033_v55, %v1011_v42  ;;  %v1083_v36 = vsel %vm1082_vm3, %v1076_v4, 0.0  ;;  %v1080_v22 = vadd.f32 %v1078_v47, %v1074_v12  ;;  %v1189_v47 = vld [vmem:[%s2150_s2 + $0xe8] sm:$0xff] }
 0x42f   :  { %1084 = vadd.xlane.f32.xlu2 %v1083_v36  ;;  %1213 = vmatpush.msra.mxu3 %v1189_v47 }
 0x430   :  { %v2102_v35 = vmax.f32 %v1051_v19, 0.0  ;;  %v1091_v51 = vsel %vm1082_vm3, %v1080_v22, 0.0 }
 0x431   :  { %1092 = vadd.xlane.f32.xlu0 %v1091_v51 }
 0x432   :  { %v1073_v10 = vmul.f32 %v2102_v35, %v2102_v35  ;;  %v1071_v32 = vadd.f32 %v1065_v60, %v2102_v35 }
 0x434   :  { %v1077_v53 = vadd.f32 %v1071_v32, %v2100_v40  ;;  %v1075_v13 = vadd.f32 %v1073_v10, %v1069_v15 }
 0x436   :  { %v1086_v8 = vsel %vm1082_vm3, %v1077_v53, 0.0  ;;  %v1081_v34 = vadd.f32 %v1079_v14, %v1075_v13 }
 0x437   :  { %1087 = vadd.xlane.f32.xlu1 %v1086_v8 }
 0x438   :  { %v1094_v50 = vsel %vm1082_vm3, %v1081_v34, 0.0 }
 0x439   :  { %1095 = vadd.xlane.f32.xlu2 %v1094_v50 }
 0x4a2   :  { %v1085_v58 = vpop.xlane.xlu2 %1084 }
 0x4a3   :  { %v1089_v1 = vmul.f32 0.03125, %v1085_v58 }
 0x4a4   :  { %v1093_v46 = vpop.xlane.xlu0 %1092 }
 0x4a5   :  { %v1099_v63 = vmul.f32 %v1089_v1, %v1089_v1  ;;  %v1097_v56 = vmul.f32 0.03125, %v1093_v46 }
 0x4a7   :  { %v1101_v27 = vsub.f32 %v1097_v56, %v1099_v63 }
 0x4a9   :  { %v1107_v52 = vadd.f32 1e-05, %v1101_v27 }
 0x4aa   :  { %v1088_v2 = vpop.xlane.xlu1 %1087 }
 0x4ab   :  { %1345 = vrsqrt.f32 %v1107_v52  ;;  %v1090_v21 = vmul.f32 0.03125, %v1088_v2  ;;  %vm1115_vm5 = vweird.f32 %v1107_v52 }
 0x4ac   :  { %v1096_v31 = vpop.xlane.xlu2 %1095 }
 0x4ad   :  { %v1100_v28 = vmul.f32 %v1090_v21, %v1090_v21  ;;  %v1098_v20 = vmul.f32 0.03125, %v1096_v31 }
 0x4af   :  { %v1102_v38 = vsub.f32 %v1098_v20, %v1100_v28 }
 0x4b1   :  { %v1346_v11 = vpop.eup %1345  ;;  %v1108_v23 = vadd.f32 1e-05, %v1102_v38 }
 0x4b2   :  { %v1110_v54 = vmul.f32 %v1346_v11, %v1107_v52  ;;  %vm1116_vm4 = vweird.f32 %v1346_v11 }
 0x4b3   :  { %1347 = vrsqrt.f32 %v1108_v23  ;;  %vm1117_vm6 = vmor %vm1115_vm5, %vm1116_vm4  ;;  %vm1125_vm8 = vweird.f32 %v1108_v23 }
 0x4b4   :  { %v1111_v41 = vmul.f32 %v1346_v11, %v1110_v54 }
 0x4b6   :  { %v1112_v18 = vmul.f32 0.5, %v1111_v41 }
 0x4b8   :  { %v1113_v45 = vsub.f32 1.5, %v1112_v18 }
 0x4b9   :  { %v1348_v24 = vpop.eup %1347 }
 0x4ba   :  { %v1120_v44 = vmul.f32 %v1348_v24, %v1108_v23  ;;  %v1114_v17 = vmul.f32 %v1346_v11, %v1113_v45  ;;  %vm1126_vm7 = vweird.f32 %v1348_v24 }
 0x4bb   :  { %vm1127_vm9 = vmor %vm1125_vm8, %vm1126_vm7 }
 0x4bc   :  { %v1121_v26 = vmul.f32 %v1348_v24, %v1120_v44  ;;  %v1118_v57 = vsel %vm1117_vm6, %v1346_v11, %v1114_v17 }
 0x4bd   :  { %v1129_v59 = vmul.f32 %v1118_v57, %v1103_v49 }
 0x4be   :  { %v1122_v43 = vmul.f32 0.5, %v1121_v26 }
 0x4bf   :  { %1137 = vperm.xlu2 %1289, %v1129_v59   ;;  %v1131_v16 = vmul.f32 %v1129_v59, %v1089_v1 }
 0x4c0   :  { %v1123_v62 = vsub.f32 1.5, %v1122_v43 }
 0x4c1   :  { %v1133_v61 = vsub.f32 %v1105_v30, %v1131_v16 }
 0x4c2   :  { %v1124_v25 = vmul.f32 %v1348_v24, %v1123_v62 }
 0x4c3   :  { %1149 = vperm.xlu0 %1287, %v1133_v61  }
 0x4c4   :  { %v1128_v39 = vsel %vm1127_vm9, %v1348_v24, %v1124_v25 }
 0x4c5   :  { %v1130_v42 = vmul.f32 %v1128_v39, %v1104_v33 }
 0x4c7   :  { %1142 = vperm.xlu1 %1288, %v1130_v42   ;;  %v1132_v4 = vmul.f32 %v1130_v42, %v1090_v21 }
 0x4c9   :  { %v1134_v12 = vsub.f32 %v1106_v29, %v1132_v4 }
 0x4cb   :  { %1154 = vperm.xlu0 %1287, %v1134_v12  }
 0x519   :  { %v1138_v55 = vpop.permute.xlu2 %1137 }
 0x51a   :  { %v1145_v5 = vmul.f32 %v1138_v55, %v2068_v7  ;;  %v1163_v19 = vmul.f32 %v1138_v55, %v2071_v6  ;;  %v1171_v36 = vmul.f32 %v1138_v55, %v2074_v48  ;;  %v1179_v22 = vmul.f32 %v1138_v55, %v2086_v3 }
 0x535   :  { %v1150_v9 = vpop.permute.xlu0 %1149 }
 0x536   :  { %v1157_v51 = vadd.f32 %v1150_v9, %v1145_v5  ;;  %v1165_v60 = vadd.f32 %v1163_v19, %v1150_v9  ;;  %v1173_v10 = vadd.f32 %v1171_v36, %v1150_v9  ;;  %v1181_v32 = vadd.f32 %v1179_v22, %v1150_v9 }
 0x538   :  { %v1159_v15 = vmax.f32 %v1157_v51, 0.0  ;;  %v1167_v53 = vmax.f32 %v1165_v60, 0.0  ;;  %v1175_v8 = vmax.f32 %v1173_v10, 0.0  ;;  %v1183_v34 = vmax.f32 %v1181_v32, 0.0 }
 0x539   :  { %v1143_v13 = vpop.permute.xlu1 %1142 }
 0x53a   :  { %v1169_v14 = vadd.f32 %v1167_v53, %v1159_v15  ;;  %v1146_v7 = vmul.f32 %v1143_v13, %v2089_v37  ;;  %v1164_v6 = vmul.f32 %v1143_v13, %v2084_v0  ;;  %v1172_v48 = vmul.f32 %v1143_v13, %v2102_v35 }
 0x53b   :  { %v1180_v3 = vmul.f32 %v1143_v13, %v2100_v40  ;;  %v1304_v40 = vld [vmem:[%s2150_s2 + $0xf0] ss:$0 sm:$0xff] }
 0x53c   :  { %v1177_v50 = vadd.f32 %v1175_v8, %v1169_v14 }
 0x53d   :  { %v1155_v58 = vpop.permute.xlu0 %1154 }
 0x53e   :  { %v1185_v1 = vadd.f32 %v1183_v34, %v1177_v50  ;;  %v1158_v46 = vadd.f32 %v1155_v58, %v1146_v7  ;;  %v1166_v63 = vadd.f32 %v1164_v6, %v1155_v58  ;;  %v1174_v56 = vadd.f32 %v1172_v48, %v1155_v58 }
 0x53f   :  { %v1182_v21 = vadd.f32 %v1180_v3, %v1155_v58 }
 0x540   :  { %v1187_v27 = vmul.f32 0.25, %v1185_v1  ;;  %v1160_v52 = vmax.f32 %v1158_v46, 0.0  ;;  %v1168_v2 = vmax.f32 %v1166_v63, 0.0  ;;  %v1176_v28 = vmax.f32 %v1174_v56, 0.0 }
 0x541   :  { %v1184_v20 = vmax.f32 %v1182_v21, 0.0 }
 0x542   :  { %v1170_v31 = vadd.f32 %v1168_v2, %v1160_v52  ;;  %1260 = vmatmul.msk.f32.vlgmr.msra.gmra.mxu3 %vm1082_vm3, %v1187_v27 }
 0x544   :  { %v1178_v37 = vadd.f32 %v1176_v28, %v1170_v31 }
 0x546   :  { %v1186_v0 = vadd.f32 %v1184_v20, %v1178_v37 }
 0x548   :  { %v1188_v38 = vmul.f32 0.25, %v1186_v0 }
 0x54a   :  { %1261 = vmatmul.msk.f32.gmra.mxu3 %vm1082_vm3, %v1188_v38 }
 0x5c5   :  { %v1215_v35 = vpop.f32.mrf.mxu3 }
 0x5c6   :  { %v1216_v11 = vadd.f32 %v1304_v40, %v1215_v35 }
 0x5c8   :  { %1222 = vst.msk [vmem:[%s2152_s3] sm:$0xff] %vm1221_vm10, %v1216_v11 }
 0x5cd   :  { %v1218_v23 = vpop.f32.mrf.mxu3 }
 0x5ce   :  { %v1219_v54 = vadd.f32 %v1304_v40, %v1218_v23 }
 0x5d0   :  { %1223 = vst.msk [vmem:[%s2152_s3 + $0x8] sm:$0xff] %vm1221_vm10, %v1219_v54 }

</bundles_post_ra>
